<compile_context>
chip_gen: v7x
topology: tpu7x:2x2x1
jax: 0.10.0
libtpu: 0.0.40
codegen_flags: <defaults>
</compile_context>

<pallas_src>
import jax
import jax.numpy as jnp
import numpy as np
from jax import lax
from jax.experimental import pallas as pl
from jax.experimental.pallas import tpu as pltpu


def _round_up(x, m):
    return (x + m - 1) // m * m


def recsys_kernel(uid_ref, iid_ref,                      # scalar prefetch (SMEM)
                  feat_ref, uemb_hbm, iemb_hbm,          # inputs
                  wfo_ref, wou_ref, woi_ref, bo_ref,
                  out_ref,                               # output block (1, 1, TB)
                  ubuf, ibuf, sems):                     # scratch
    _, TB, _E = ubuf.shape
    c = pl.program_id(0)            # parallel chunk (megacore axis)
    s = pl.program_id(1)            # sequential step within the chunk
    ni = pl.num_programs(1)
    tile = c * ni + s
    slot = s & 1

    def issue_gather(tile_idx, dst_slot):
        base = tile_idx * TB

        def body(r, carry):
            u = uid_ref[base + r]
            i = iid_ref[base + r]
            pltpu.make_async_copy(uemb_hbm.at[pl.ds(u, 1), :],
                                  ubuf.at[dst_slot, pl.ds(r, 1), :],
                                  sems.at[0, dst_slot]).start()
            pltpu.make_async_copy(iemb_hbm.at[pl.ds(i, 1), :],
                                  ibuf.at[dst_slot, pl.ds(r, 1), :],
                                  sems.at[1, dst_slot]).start()
            return carry

        lax.fori_loop(0, TB, body, 0, unroll=8)

    # Prime this chunk's first tile (fires once per core even when the outer
    # axis is split across TensorCores, because the inner axis restarts at 0).
    @pl.when(s == 0)
    def _():
        issue_gather(tile, 0)

    # Prefetch the NEXT tile's gathers into the other slot while this tile
    # computes (cross-step double buffering).
    @pl.when(s + 1 < ni)
    def _():
        issue_gather(tile + 1, 1 - slot)

    # Feature contribution (VPU FMA + lane reduce) overlaps the in-flight DMAs.
    feat_part = jnp.sum(feat_ref[...] * wfo_ref[...], axis=-1)          # (TB,)

    # Drain this tile's gathers: ONE wait per table.  DMA semaphores count
    # bytes, so a (TB, E)-sized dummy descriptor drains all TB row copies.
    pltpu.make_async_copy(ubuf.at[slot], ubuf.at[slot], sems.at[0, slot]).wait()
    pltpu.make_async_copy(ibuf.at[slot], ibuf.at[slot], sems.at[1, slot]).wait()

    emb = ubuf[slot] * wou_ref[...] + ibuf[slot] * woi_ref[...]         # (TB, E)
    row = feat_part + jnp.sum(emb, axis=-1)                             # (TB,)
    out_ref[...] = row[None, None, :] + bo_ref[...]                     # (1, 1, TB)


def recsys_forward(user_ids, item_ids, user_features, item_features, params,
                   *, batch_tile=512):
    uemb = params["user_embedding"].astype(jnp.float32)
    iemb = params["item_embedding"].astype(jnp.float32)
    num_users, E = uemb.shape
    num_items = iemb.shape[0]
    B, Fu = user_features.shape
    Fi = item_features.shape[1]
    F2 = Fu + Fi

    # Batch tiling: TB multiple of 8 (f32 sublane); keep >= 2 tiles when the
    # batch allows so a v7x megacore can split the parallel axis across cores.
    B8 = _round_up(B, 8)
    TB = min(_round_up(batch_tile, 8), B8)
    if TB == B8 and B8 >= 16:
        TB = _round_up((B8 + 1) // 2, 8)
    Bp = _round_up(B8, TB)
    nt = Bp // TB
    nc = 2 if nt % 2 == 0 else 1          # outer (parallel) chunks
    ni = nt // nc                          # inner (sequential) steps per chunk

    feat = jnp.concatenate(
        [user_features.astype(jnp.float32), item_features.astype(jnp.float32)],
        axis=1)
    # torch nn.Embedding raises on out-of-range ids; clamp so every HBM row
    # gather is in-bounds and deterministic.
    uid = jnp.clip(user_ids.astype(jnp.int32), 0, num_users - 1)
    iid = jnp.clip(item_ids.astype(jnp.int32), 0, num_items - 1)
    if Bp != B:
        feat = jnp.pad(feat, ((0, Bp - B), (0, 0)))
        uid = jnp.pad(uid, (0, Bp - B))
        iid = jnp.pad(iid, (0, Bp - B))
    # NOTE: uid/iid (4*Bp bytes each) are scalar-prefetched into SMEM; fine up
    # to ~100k-row batches.  Beyond that, switch to per-tile SMEM-blocked id
    # inputs (they are never used in an index_map).

    # Explicit VMEM budget (E/F2 padded to the 128-lane tile).
    lane = 128
    epad = _round_up(E, lane)
    fpad = _round_up(F2, lane)
    tpad = _round_up(TB, lane)
    need = (2 * 2 * TB * epad * 4          # double-buffered gather scratch
            + 2 * TB * fpad * 4            # pipelined feature blocks
            + 2 * 8 * tpad * 4             # output blocks
            + 8 * 8 * lane * 4)            # resident weight rows
    vmem_limit = int(min(max(2 * need, 32 * 2**20), 64 * 2**20))

    flops = Bp * (2 * F2 + 4 * E + 4)
    bytes_accessed = 4 * (Bp * F2 + 2 * Bp * E + F2 + 2 * E + 1 + Bp) + 8 * Bp

    grid_spec = pltpu.PrefetchScalarGridSpec(
        num_scalar_prefetch=2,                                  # uid, iid -> SMEM
        grid=(nc, ni),
        in_specs=[
            pl.BlockSpec((TB, F2), lambda c, s, u, i: (c * ni + s, 0)),  # features
            pl.BlockSpec(memory_space=pl.ANY),                           # user table (HBM)
            pl.BlockSpec(memory_space=pl.ANY),                           # item table (HBM)
            pl.BlockSpec((1, F2), lambda c, s, u, i: (0, 0)),            # folded feat->out row
            pl.BlockSpec((1, E), lambda c, s, u, i: (0, 0)),             # wo_u row
            pl.BlockSpec((1, E), lambda c, s, u, i: (0, 0)),             # wo_i row
            pl.BlockSpec((1, 1), lambda c, s, u, i: (0, 0)),             # folded bias
        ],
        out_specs=pl.BlockSpec((1, 1, TB), lambda c, s, u, i: (c * ni + s, 0, 0)),
        scratch_shapes=[
            pltpu.VMEM((2, TB, E), jnp.float32),     # user rows, double buffered
            pltpu.VMEM((2, TB, E), jnp.float32),     # item rows, double buffered
            pltpu.SemaphoreType.DMA((2, 2)),         # [table, slot]
        ],
    )

    out_tiles = pl.pallas_call(
        recsys_kernel,
        out_shape=jax.ShapeDtypeStruct((nt, 1, TB), jnp.float32),
        grid_spec=grid_spec,
        compiler_params=pltpu.CompilerParams(
            dimension_semantics=("parallel", "arbitrary"),
            vmem_limit_bytes=vmem_limit),
        cost_estimate=pl.CostEstimate(flops=flops, transcendentals=0,
                                      bytes_accessed=bytes_accessed),
    )(uid, iid, feat, uemb, iemb,
      params["w_feat"], params["wo_u"], params["wo_i"], params["bo_fold"])

    return out_tiles.reshape(Bp)[:B].reshape(B, 1)


def init_params(key, num_users, num_items, embed_dim,
                user_feature_dim, item_feature_dim):
    """Raw params in torch layout: Linear weight is (out, in)."""
    ks = jax.random.split(key, 5)
    user_embedding = jax.random.normal(ks[0], (num_users, embed_dim), jnp.float32)
    item_embedding = jax.random.normal(ks[1], (num_items, embed_dim), jnp.float32)

    def linear_init(k, fan_in, fan_out):
        bound = 1.0 / np.sqrt(fan_in)
        kw, kb = jax.random.split(k)
        w = jax.random.uniform(kw, (fan_out, fan_in), jnp.float32, -bound, bound)
        b = jax.random.uniform(kb, (fan_out,), jnp.float32, -bound, bound)
        return w, b

    wu, bu = linear_init(ks[2], user_feature_dim, embed_dim)   # (E, Fu), (E,)
    wi, bi = linear_init(ks[3], item_feature_dim, embed_dim)   # (E, Fi), (E,)
    wo, bo = linear_init(ks[4], 2 * embed_dim, 1)              # (1, 2E), (1,)
    return {"user_embedding": user_embedding, "item_embedding": item_embedding,
            "wu": wu, "bu": bu, "wi": wi, "bi": bi, "wo": wo, "bo": bo}


def pack_params(raw):
    """Kernel layout.  The model is linear after the embedding lookup, so the
    feature Linears are folded through the output Linear wrapper-side:
        w_feat = [wo_u @ Wu | wo_i @ Wi]   (1, Fu+Fi)
        bo'    = bo + wo_u @ bu + wo_i @ bi
        out    = sum(Eu[uid]*wo_u + Ei[iid]*wo_i, -1) + feat . w_feat + bo'
    which is exactly equivalent to the torch forward."""
    E = raw["user_embedding"].shape[1]
    wo = raw["wo"]                        # (1, 2E)
    wo_u, wo_i = wo[:, :E], wo[:, E:]     # (1, E) each
    w_feat = jnp.concatenate([wo_u @ raw["wu"], wo_i @ raw["wi"]], axis=1)
    bo_fold = (raw["bo"] + wo_u @ raw["bu"] + wo_i @ raw["bi"]).reshape(1, 1)
    return {"user_embedding": raw["user_embedding"],
            "item_embedding": raw["item_embedding"],
            "w_feat": w_feat, "wo_u": wo_u, "wo_i": wo_i, "bo_fold": bo_fold}


def reference_forward(user_ids, item_ids, user_features, item_features, raw):
    ue = raw["user_embedding"][user_ids]
    ie = raw["item_embedding"][item_ids]
    ufe = user_features @ raw["wu"].T + raw["bu"]
    ife = item_features @ raw["wi"].T + raw["bi"]
    inter = jnp.concatenate([ue + ufe, ie + ife], axis=1)
    return inter @ raw["wo"].T + raw["bo"]


if __name__ == "__main__":
    embed_dim = 8
    user_feature_dim = 4
    item_feature_dim = 4
    num_users = 4
    num_items = 4

    key = jax.random.PRNGKey(0)
    kp, kd = jax.random.split(key)
    raw = init_params(kp, num_users, num_items, embed_dim,
                      user_feature_dim, item_feature_dim)
    packed = pack_params(raw)

    # (batch, batch_tile): a single-tile run and a multi-tile run that exercises
    # priming, cross-step prefetch, slot swapping and the parallel chunk axis.
    for batch, tile in ((8, 512), (64, 16)):
        ku, ki, kuf, kif = jax.random.split(jax.random.fold_in(kd, batch), 4)
        user_ids = jax.random.randint(ku, (batch,), 0, num_users, dtype=jnp.int32)
        item_ids = jax.random.randint(ki, (batch,), 0, num_items, dtype=jnp.int32)
        user_features = jax.random.normal(kuf, (batch, user_feature_dim),
                                          jnp.float32)
        item_features = jax.random.normal(kif, (batch, item_feature_dim),
                                          jnp.float32)

        out = recsys_forward(user_ids, item_ids, user_features, item_features,
                             packed, batch_tile=tile)
        out = jax.block_until_ready(out)

        ref = reference_forward(user_ids, item_ids, user_features,
                                item_features, raw)
        np.testing.assert_allclose(np.asarray(out), np.asarray(ref),
                                   rtol=1e-5, atol=1e-4)

    print("KERNEL_OK")
</pallas_src>

<mosaic_0001>
module attributes {stable_mosaic.version = 11 : i64} {
  func.func @recsys_kernel(%arg0: i32, %arg1: i32, %arg2: memref<8xi32, #tpu.memory_space<smem>>, %arg3: memref<8xi32, #tpu.memory_space<smem>>, %arg4: memref<8x8xf32, #tpu.memory_space<vmem>>, %arg5: memref<4x8xf32, #tpu.memory_space<any>>, %arg6: memref<4x8xf32, #tpu.memory_space<any>>, %arg7: memref<1x8xf32, #tpu.memory_space<vmem>>, %arg8: memref<1x8xf32, #tpu.memory_space<vmem>>, %arg9: memref<1x8xf32, #tpu.memory_space<vmem>>, %arg10: memref<1x1xf32, #tpu.memory_space<vmem>>, %arg11: memref<1x1x8xf32, #tpu.memory_space<vmem>>, %arg12: memref<2x8x8xf32, #tpu.memory_space<vmem>>, %arg13: memref<2x8x8xf32, #tpu.memory_space<vmem>>, %arg14: memref<2x2x!tpu.dma_semaphore, #tpu.memory_space<semaphore_mem>>) attributes {dimension_semantics = [#tpu.dimension_semantics<parallel>, #tpu.dimension_semantics<arbitrary>], iteration_bounds = array<i64: 1, 1>, scalar_prefetch = 2 : i64, scratch_operands = 3 : i64, tpu.core_type = #tpu.core_type<tc>, window_params = [{transform_indices = @transform_0, window_bounds = array<i64: 8, 8>}, {}, {}, {pipeline_mode = #tpu.pipeline_mode<synchronous>, transform_indices = @transform_3, window_bounds = array<i64: 1, 8>}, {pipeline_mode = #tpu.pipeline_mode<synchronous>, transform_indices = @transform_4, window_bounds = array<i64: 1, 8>}, {pipeline_mode = #tpu.pipeline_mode<synchronous>, transform_indices = @transform_5, window_bounds = array<i64: 1, 8>}, {pipeline_mode = #tpu.pipeline_mode<synchronous>, transform_indices = @transform_6, window_bounds = array<i64: 1, 1>}, {transform_indices = @transform_7, window_bounds = array<i64: 1, 1, 8>}]} {
    %c1_i32 = arith.constant 1 : i32
    %0 = arith.muli %arg0, %c1_i32 : i32
    %1 = arith.addi %0, %arg1 : i32
    %c1_i32_0 = arith.constant 1 : i32
    %2 = arith.andi %arg1, %c1_i32_0 : i32
    %c0_i32 = arith.constant 0 : i32
    %3 = arith.cmpi eq, %arg1, %c0_i32 : i32
    %4 = arith.extui %3 : i1 to i32
    %c0_i32_1 = arith.constant 0 : i32
    %5 = arith.cmpi ne, %4, %c0_i32_1 : i32
    scf.if %5 {
      %c8_i32 = arith.constant 8 : i32
      %48 = arith.muli %1, %c8_i32 : i32
      %c0_i32_32 = arith.constant 0 : i32
      %49 = arith.addi %48, %c0_i32_32 : i32
      %50 = arith.index_cast %49 : i32 to index
      %51 = memref.load %arg2[%50] : memref<8xi32, #tpu.memory_space<smem>>
      %52 = arith.addi %48, %c0_i32_32 : i32
      %53 = arith.index_cast %52 : i32 to index
      %54 = memref.load %arg3[%53] : memref<8xi32, #tpu.memory_space<smem>>
      %c0_i32_33 = arith.constant 0 : i32
      %c0_i32_34 = arith.constant 0 : i32
      %c0_i32_35 = arith.constant 0 : i32
      %c0_i32_36 = arith.constant 0 : i32
      %55 = tpu.memref_slice %arg5[%51, %c0_i32_36] : memref<4x8xf32, #tpu.memory_space<any>> -> memref<1x8xf32, #tpu.memory_space<any>>
      %c0_i32_37 = arith.constant 0 : i32
      %56 = tpu.memref_slice %arg12[%c0_i32_33, %c0_i32_32, %c0_i32_37] : memref<2x8x8xf32, #tpu.memory_space<vmem>> -> memref<1x1x8xf32, #tpu.memory_space<vmem>>
      %57 = tpu.memref_squeeze %56 : memref<1x1x8xf32, #tpu.memory_space<vmem>> -> memref<1x8xf32, #tpu.memory_space<vmem>>
      %58 = tpu.memref_slice %arg14[%c0_i32_34, %c0_i32_35] : memref<2x2x!tpu.dma_semaphore, #tpu.memory_space<semaphore_mem>> -> memref<1x1x!tpu.dma_semaphore, #tpu.memory_space<semaphore_mem>>
      %59 = tpu.memref_squeeze %58 : memref<1x1x!tpu.dma_semaphore, #tpu.memory_space<semaphore_mem>> -> memref<!tpu.dma_semaphore, #tpu.memory_space<semaphore_mem>>
      tpu.enqueue_dma source(%55 : memref<1x8xf32, #tpu.memory_space<any>>) target(%57 : memref<1x8xf32, #tpu.memory_space<vmem>>) target_semaphore(%59 : memref<!tpu.dma_semaphore, #tpu.memory_space<semaphore_mem>>)
      %c0_i32_38 = arith.constant 0 : i32
      %c1_i32_39 = arith.constant 1 : i32
      %c0_i32_40 = arith.constant 0 : i32
      %c0_i32_41 = arith.constant 0 : i32
      %60 = tpu.memref_slice %arg6[%54, %c0_i32_41] : memref<4x8xf32, #tpu.memory_space<any>> -> memref<1x8xf32, #tpu.memory_space<any>>
      %c0_i32_42 = arith.constant 0 : i32
      %61 = tpu.memref_slice %arg13[%c0_i32_38, %c0_i32_32, %c0_i32_42] : memref<2x8x8xf32, #tpu.memory_space<vmem>> -> memref<1x1x8xf32, #tpu.memory_space<vmem>>
      %62 = tpu.memref_squeeze %61 : memref<1x1x8xf32, #tpu.memory_space<vmem>> -> memref<1x8xf32, #tpu.memory_space<vmem>>
      %63 = tpu.memref_slice %arg14[%c1_i32_39, %c0_i32_40] : memref<2x2x!tpu.dma_semaphore, #tpu.memory_space<semaphore_mem>> -> memref<1x1x!tpu.dma_semaphore, #tpu.memory_space<semaphore_mem>>
      %64 = tpu.memref_squeeze %63 : memref<1x1x!tpu.dma_semaphore, #tpu.memory_space<semaphore_mem>> -> memref<!tpu.dma_semaphore, #tpu.memory_space<semaphore_mem>>
      tpu.enqueue_dma source(%60 : memref<1x8xf32, #tpu.memory_space<any>>) target(%62 : memref<1x8xf32, #tpu.memory_space<vmem>>) target_semaphore(%64 : memref<!tpu.dma_semaphore, #tpu.memory_space<semaphore_mem>>)
      %c1_i32_43 = arith.constant 1 : i32
      %65 = arith.addi %48, %c1_i32_43 : i32
      %66 = arith.index_cast %65 : i32 to index
      %67 = memref.load %arg2[%66] : memref<8xi32, #tpu.memory_space<smem>>
      %68 = arith.addi %48, %c1_i32_43 : i32
      %69 = arith.index_cast %68 : i32 to index
      %70 = memref.load %arg3[%69] : memref<8xi32, #tpu.memory_space<smem>>
      %c0_i32_44 = arith.constant 0 : i32
      %c0_i32_45 = arith.constant 0 : i32
      %c0_i32_46 = arith.constant 0 : i32
      %c0_i32_47 = arith.constant 0 : i32
      %71 = tpu.memref_slice %arg5[%67, %c0_i32_47] : memref<4x8xf32, #tpu.memory_space<any>> -> memref<1x8xf32, #tpu.memory_space<any>>
      %c0_i32_48 = arith.constant 0 : i32
      %72 = tpu.memref_slice %arg12[%c0_i32_44, %c1_i32_43, %c0_i32_48] : memref<2x8x8xf32, #tpu.memory_space<vmem>> -> memref<1x1x8xf32, #tpu.memory_space<vmem>>
      %73 = tpu.memref_squeeze %72 : memref<1x1x8xf32, #tpu.memory_space<vmem>> -> memref<1x8xf32, #tpu.memory_space<vmem>>
      %74 = tpu.memref_slice %arg14[%c0_i32_45, %c0_i32_46] : memref<2x2x!tpu.dma_semaphore, #tpu.memory_space<semaphore_mem>> -> memref<1x1x!tpu.dma_semaphore, #tpu.memory_space<semaphore_mem>>
      %75 = tpu.memref_squeeze %74 : memref<1x1x!tpu.dma_semaphore, #tpu.memory_space<semaphore_mem>> -> memref<!tpu.dma_semaphore, #tpu.memory_space<semaphore_mem>>
      tpu.enqueue_dma source(%71 : memref<1x8xf32, #tpu.memory_space<any>>) target(%73 : memref<1x8xf32, #tpu.memory_space<vmem>>) target_semaphore(%75 : memref<!tpu.dma_semaphore, #tpu.memory_space<semaphore_mem>>)
      %c0_i32_49 = arith.constant 0 : i32
      %c1_i32_50 = arith.constant 1 : i32
      %c0_i32_51 = arith.constant 0 : i32
      %c0_i32_52 = arith.constant 0 : i32
      %76 = tpu.memref_slice %arg6[%70, %c0_i32_52] : memref<4x8xf32, #tpu.memory_space<any>> -> memref<1x8xf32, #tpu.memory_space<any>>
      %c0_i32_53 = arith.constant 0 : i32
      %77 = tpu.memref_slice %arg13[%c0_i32_49, %c1_i32_43, %c0_i32_53] : memref<2x8x8xf32, #tpu.memory_space<vmem>> -> memref<1x1x8xf32, #tpu.memory_space<vmem>>
      %78 = tpu.memref_squeeze %77 : memref<1x1x8xf32, #tpu.memory_space<vmem>> -> memref<1x8xf32, #tpu.memory_space<vmem>>
      %79 = tpu.memref_slice %arg14[%c1_i32_50, %c0_i32_51] : memref<2x2x!tpu.dma_semaphore, #tpu.memory_space<semaphore_mem>> -> memref<1x1x!tpu.dma_semaphore, #tpu.memory_space<semaphore_mem>>
      %80 = tpu.memref_squeeze %79 : memref<1x1x!tpu.dma_semaphore, #tpu.memory_space<semaphore_mem>> -> memref<!tpu.dma_semaphore, #tpu.memory_space<semaphore_mem>>
      tpu.enqueue_dma source(%76 : memref<1x8xf32, #tpu.memory_space<any>>) target(%78 : memref<1x8xf32, #tpu.memory_space<vmem>>) target_semaphore(%80 : memref<!tpu.dma_semaphore, #tpu.memory_space<semaphore_mem>>)
      %c2_i32 = arith.constant 2 : i32
      %81 = arith.addi %48, %c2_i32 : i32
      %82 = arith.index_cast %81 : i32 to index
      %83 = memref.load %arg2[%82] : memref<8xi32, #tpu.memory_space<smem>>
      %84 = arith.addi %48, %c2_i32 : i32
      %85 = arith.index_cast %84 : i32 to index
      %86 = memref.load %arg3[%85] : memref<8xi32, #tpu.memory_space<smem>>
      %c0_i32_54 = arith.constant 0 : i32
      %c0_i32_55 = arith.constant 0 : i32
      %c0_i32_56 = arith.constant 0 : i32
      %c0_i32_57 = arith.constant 0 : i32
      %87 = tpu.memref_slice %arg5[%83, %c0_i32_57] : memref<4x8xf32, #tpu.memory_space<any>> -> memref<1x8xf32, #tpu.memory_space<any>>
      %c0_i32_58 = arith.constant 0 : i32
      %88 = tpu.memref_slice %arg12[%c0_i32_54, %c2_i32, %c0_i32_58] : memref<2x8x8xf32, #tpu.memory_space<vmem>> -> memref<1x1x8xf32, #tpu.memory_space<vmem>>
      %89 = tpu.memref_squeeze %88 : memref<1x1x8xf32, #tpu.memory_space<vmem>> -> memref<1x8xf32, #tpu.memory_space<vmem>>
      %90 = tpu.memref_slice %arg14[%c0_i32_55, %c0_i32_56] : memref<2x2x!tpu.dma_semaphore, #tpu.memory_space<semaphore_mem>> -> memref<1x1x!tpu.dma_semaphore, #tpu.memory_space<semaphore_mem>>
      %91 = tpu.memref_squeeze %90 : memref<1x1x!tpu.dma_semaphore, #tpu.memory_space<semaphore_mem>> -> memref<!tpu.dma_semaphore, #tpu.memory_space<semaphore_mem>>
      tpu.enqueue_dma source(%87 : memref<1x8xf32, #tpu.memory_space<any>>) target(%89 : memref<1x8xf32, #tpu.memory_space<vmem>>) target_semaphore(%91 : memref<!tpu.dma_semaphore, #tpu.memory_space<semaphore_mem>>)
      %c0_i32_59 = arith.constant 0 : i32
      %c1_i32_60 = arith.constant 1 : i32
      %c0_i32_61 = arith.constant 0 : i32
      %c0_i32_62 = arith.constant 0 : i32
      %92 = tpu.memref_slice %arg6[%86, %c0_i32_62] : memref<4x8xf32, #tpu.memory_space<any>> -> memref<1x8xf32, #tpu.memory_space<any>>
      %c0_i32_63 = arith.constant 0 : i32
      %93 = tpu.memref_slice %arg13[%c0_i32_59, %c2_i32, %c0_i32_63] : memref<2x8x8xf32, #tpu.memory_space<vmem>> -> memref<1x1x8xf32, #tpu.memory_space<vmem>>
      %94 = tpu.memref_squeeze %93 : memref<1x1x8xf32, #tpu.memory_space<vmem>> -> memref<1x8xf32, #tpu.memory_space<vmem>>
      %95 = tpu.memref_slice %arg14[%c1_i32_60, %c0_i32_61] : memref<2x2x!tpu.dma_semaphore, #tpu.memory_space<semaphore_mem>> -> memref<1x1x!tpu.dma_semaphore, #tpu.memory_space<semaphore_mem>>
      %96 = tpu.memref_squeeze %95 : memref<1x1x!tpu.dma_semaphore, #tpu.memory_space<semaphore_mem>> -> memref<!tpu.dma_semaphore, #tpu.memory_space<semaphore_mem>>
      tpu.enqueue_dma source(%92 : memref<1x8xf32, #tpu.memory_space<any>>) target(%94 : memref<1x8xf32, #tpu.memory_space<vmem>>) target_semaphore(%96 : memref<!tpu.dma_semaphore, #tpu.memory_space<semaphore_mem>>)
      %c3_i32 = arith.constant 3 : i32
      %97 = arith.addi %48, %c3_i32 : i32
      %98 = arith.index_cast %97 : i32 to index
      %99 = memref.load %arg2[%98] : memref<8xi32, #tpu.memory_space<smem>>
      %100 = arith.addi %48, %c3_i32 : i32
      %101 = arith.index_cast %100 : i32 to index
      %102 = memref.load %arg3[%101] : memref<8xi32, #tpu.memory_space<smem>>
      %c0_i32_64 = arith.constant 0 : i32
      %c0_i32_65 = arith.constant 0 : i32
      %c0_i32_66 = arith.constant 0 : i32
      %c0_i32_67 = arith.constant 0 : i32
      %103 = tpu.memref_slice %arg5[%99, %c0_i32_67] : memref<4x8xf32, #tpu.memory_space<any>> -> memref<1x8xf32, #tpu.memory_space<any>>
      %c0_i32_68 = arith.constant 0 : i32
      %104 = tpu.memref_slice %arg12[%c0_i32_64, %c3_i32, %c0_i32_68] : memref<2x8x8xf32, #tpu.memory_space<vmem>> -> memref<1x1x8xf32, #tpu.memory_space<vmem>>
      %105 = tpu.memref_squeeze %104 : memref<1x1x8xf32, #tpu.memory_space<vmem>> -> memref<1x8xf32, #tpu.memory_space<vmem>>
      %106 = tpu.memref_slice %arg14[%c0_i32_65, %c0_i32_66] : memref<2x2x!tpu.dma_semaphore, #tpu.memory_space<semaphore_mem>> -> memref<1x1x!tpu.dma_semaphore, #tpu.memory_space<semaphore_mem>>
      %107 = tpu.memref_squeeze %106 : memref<1x1x!tpu.dma_semaphore, #tpu.memory_space<semaphore_mem>> -> memref<!tpu.dma_semaphore, #tpu.memory_space<semaphore_mem>>
      tpu.enqueue_dma source(%103 : memref<1x8xf32, #tpu.memory_space<any>>) target(%105 : memref<1x8xf32, #tpu.memory_space<vmem>>) target_semaphore(%107 : memref<!tpu.dma_semaphore, #tpu.memory_space<semaphore_mem>>)
      %c0_i32_69 = arith.constant 0 : i32
      %c1_i32_70 = arith.constant 1 : i32
      %c0_i32_71 = arith.constant 0 : i32
      %c0_i32_72 = arith.constant 0 : i32
      %108 = tpu.memref_slice %arg6[%102, %c0_i32_72] : memref<4x8xf32, #tpu.memory_space<any>> -> memref<1x8xf32, #tpu.memory_space<any>>
      %c0_i32_73 = arith.constant 0 : i32
      %109 = tpu.memref_slice %arg13[%c0_i32_69, %c3_i32, %c0_i32_73] : memref<2x8x8xf32, #tpu.memory_space<vmem>> -> memref<1x1x8xf32, #tpu.memory_space<vmem>>
      %110 = tpu.memref_squeeze %109 : memref<1x1x8xf32, #tpu.memory_space<vmem>> -> memref<1x8xf32, #tpu.memory_space<vmem>>
      %111 = tpu.memref_slice %arg14[%c1_i32_70, %c0_i32_71] : memref<2x2x!tpu.dma_semaphore, #tpu.memory_space<semaphore_mem>> -> memref<1x1x!tpu.dma_semaphore, #tpu.memory_space<semaphore_mem>>
      %112 = tpu.memref_squeeze %111 : memref<1x1x!tpu.dma_semaphore, #tpu.memory_space<semaphore_mem>> -> memref<!tpu.dma_semaphore, #tpu.memory_space<semaphore_mem>>
      tpu.enqueue_dma source(%108 : memref<1x8xf32, #tpu.memory_space<any>>) target(%110 : memref<1x8xf32, #tpu.memory_space<vmem>>) target_semaphore(%112 : memref<!tpu.dma_semaphore, #tpu.memory_space<semaphore_mem>>)
      %c4_i32 = arith.constant 4 : i32
      %113 = arith.addi %48, %c4_i32 : i32
      %114 = arith.index_cast %113 : i32 to index
      %115 = memref.load %arg2[%114] : memref<8xi32, #tpu.memory_space<smem>>
      %116 = arith.addi %48, %c4_i32 : i32
      %117 = arith.index_cast %116 : i32 to index
      %118 = memref.load %arg3[%117] : memref<8xi32, #tpu.memory_space<smem>>
      %c0_i32_74 = arith.constant 0 : i32
      %c0_i32_75 = arith.constant 0 : i32
      %c0_i32_76 = arith.constant 0 : i32
      %c0_i32_77 = arith.constant 0 : i32
      %119 = tpu.memref_slice %arg5[%115, %c0_i32_77] : memref<4x8xf32, #tpu.memory_space<any>> -> memref<1x8xf32, #tpu.memory_space<any>>
      %c0_i32_78 = arith.constant 0 : i32
      %120 = tpu.memref_slice %arg12[%c0_i32_74, %c4_i32, %c0_i32_78] : memref<2x8x8xf32, #tpu.memory_space<vmem>> -> memref<1x1x8xf32, #tpu.memory_space<vmem>>
      %121 = tpu.memref_squeeze %120 : memref<1x1x8xf32, #tpu.memory_space<vmem>> -> memref<1x8xf32, #tpu.memory_space<vmem>>
      %122 = tpu.memref_slice %arg14[%c0_i32_75, %c0_i32_76] : memref<2x2x!tpu.dma_semaphore, #tpu.memory_space<semaphore_mem>> -> memref<1x1x!tpu.dma_semaphore, #tpu.memory_space<semaphore_mem>>
      %123 = tpu.memref_squeeze %122 : memref<1x1x!tpu.dma_semaphore, #tpu.memory_space<semaphore_mem>> -> memref<!tpu.dma_semaphore, #tpu.memory_space<semaphore_mem>>
      tpu.enqueue_dma source(%119 : memref<1x8xf32, #tpu.memory_space<any>>) target(%121 : memref<1x8xf32, #tpu.memory_space<vmem>>) target_semaphore(%123 : memref<!tpu.dma_semaphore, #tpu.memory_space<semaphore_mem>>)
      %c0_i32_79 = arith.constant 0 : i32
      %c1_i32_80 = arith.constant 1 : i32
      %c0_i32_81 = arith.constant 0 : i32
      %c0_i32_82 = arith.constant 0 : i32
      %124 = tpu.memref_slice %arg6[%118, %c0_i32_82] : memref<4x8xf32, #tpu.memory_space<any>> -> memref<1x8xf32, #tpu.memory_space<any>>
      %c0_i32_83 = arith.constant 0 : i32
      %125 = tpu.memref_slice %arg13[%c0_i32_79, %c4_i32, %c0_i32_83] : memref<2x8x8xf32, #tpu.memory_space<vmem>> -> memref<1x1x8xf32, #tpu.memory_space<vmem>>
      %126 = tpu.memref_squeeze %125 : memref<1x1x8xf32, #tpu.memory_space<vmem>> -> memref<1x8xf32, #tpu.memory_space<vmem>>
      %127 = tpu.memref_slice %arg14[%c1_i32_80, %c0_i32_81] : memref<2x2x!tpu.dma_semaphore, #tpu.memory_space<semaphore_mem>> -> memref<1x1x!tpu.dma_semaphore, #tpu.memory_space<semaphore_mem>>
      %128 = tpu.memref_squeeze %127 : memref<1x1x!tpu.dma_semaphore, #tpu.memory_space<semaphore_mem>> -> memref<!tpu.dma_semaphore, #tpu.memory_space<semaphore_mem>>
      tpu.enqueue_dma source(%124 : memref<1x8xf32, #tpu.memory_space<any>>) target(%126 : memref<1x8xf32, #tpu.memory_space<vmem>>) target_semaphore(%128 : memref<!tpu.dma_semaphore, #tpu.memory_space<semaphore_mem>>)
      %c5_i32 = arith.constant 5 : i32
      %129 = arith.addi %48, %c5_i32 : i32
      %130 = arith.index_cast %129 : i32 to index
      %131 = memref.load %arg2[%130] : memref<8xi32, #tpu.memory_space<smem>>
      %132 = arith.addi %48, %c5_i32 : i32
      %133 = arith.index_cast %132 : i32 to index
      %134 = memref.load %arg3[%133] : memref<8xi32, #tpu.memory_space<smem>>
      %c0_i32_84 = arith.constant 0 : i32
      %c0_i32_85 = arith.constant 0 : i32
      %c0_i32_86 = arith.constant 0 : i32
      %c0_i32_87 = arith.constant 0 : i32
      %135 = tpu.memref_slice %arg5[%131, %c0_i32_87] : memref<4x8xf32, #tpu.memory_space<any>> -> memref<1x8xf32, #tpu.memory_space<any>>
      %c0_i32_88 = arith.constant 0 : i32
      %136 = tpu.memref_slice %arg12[%c0_i32_84, %c5_i32, %c0_i32_88] : memref<2x8x8xf32, #tpu.memory_space<vmem>> -> memref<1x1x8xf32, #tpu.memory_space<vmem>>
      %137 = tpu.memref_squeeze %136 : memref<1x1x8xf32, #tpu.memory_space<vmem>> -> memref<1x8xf32, #tpu.memory_space<vmem>>
      %138 = tpu.memref_slice %arg14[%c0_i32_85, %c0_i32_86] : memref<2x2x!tpu.dma_semaphore, #tpu.memory_space<semaphore_mem>> -> memref<1x1x!tpu.dma_semaphore, #tpu.memory_space<semaphore_mem>>
      %139 = tpu.memref_squeeze %138 : memref<1x1x!tpu.dma_semaphore, #tpu.memory_space<semaphore_mem>> -> memref<!tpu.dma_semaphore, #tpu.memory_space<semaphore_mem>>
      tpu.enqueue_dma source(%135 : memref<1x8xf32, #tpu.memory_space<any>>) target(%137 : memref<1x8xf32, #tpu.memory_space<vmem>>) target_semaphore(%139 : memref<!tpu.dma_semaphore, #tpu.memory_space<semaphore_mem>>)
      %c0_i32_89 = arith.constant 0 : i32
      %c1_i32_90 = arith.constant 1 : i32
      %c0_i32_91 = arith.constant 0 : i32
      %c0_i32_92 = arith.constant 0 : i32
      %140 = tpu.memref_slice %arg6[%134, %c0_i32_92] : memref<4x8xf32, #tpu.memory_space<any>> -> memref<1x8xf32, #tpu.memory_space<any>>
      %c0_i32_93 = arith.constant 0 : i32
      %141 = tpu.memref_slice %arg13[%c0_i32_89, %c5_i32, %c0_i32_93] : memref<2x8x8xf32, #tpu.memory_space<vmem>> -> memref<1x1x8xf32, #tpu.memory_space<vmem>>
      %142 = tpu.memref_squeeze %141 : memref<1x1x8xf32, #tpu.memory_space<vmem>> -> memref<1x8xf32, #tpu.memory_space<vmem>>
      %143 = tpu.memref_slice %arg14[%c1_i32_90, %c0_i32_91] : memref<2x2x!tpu.dma_semaphore, #tpu.memory_space<semaphore_mem>> -> memref<1x1x!tpu.dma_semaphore, #tpu.memory_space<semaphore_mem>>
      %144 = tpu.memref_squeeze %143 : memref<1x1x!tpu.dma_semaphore, #tpu.memory_space<semaphore_mem>> -> memref<!tpu.dma_semaphore, #tpu.memory_space<semaphore_mem>>
      tpu.enqueue_dma source(%140 : memref<1x8xf32, #tpu.memory_space<any>>) target(%142 : memref<1x8xf32, #tpu.memory_space<vmem>>) target_semaphore(%144 : memref<!tpu.dma_semaphore, #tpu.memory_space<semaphore_mem>>)
      %c6_i32 = arith.constant 6 : i32
      %145 = arith.addi %48, %c6_i32 : i32
      %146 = arith.index_cast %145 : i32 to index
      %147 = memref.load %arg2[%146] : memref<8xi32, #tpu.memory_space<smem>>
      %148 = arith.addi %48, %c6_i32 : i32
      %149 = arith.index_cast %148 : i32 to index
      %150 = memref.load %arg3[%149] : memref<8xi32, #tpu.memory_space<smem>>
      %c0_i32_94 = arith.constant 0 : i32
      %c0_i32_95 = arith.constant 0 : i32
      %c0_i32_96 = arith.constant 0 : i32
      %c0_i32_97 = arith.constant 0 : i32
      %151 = tpu.memref_slice %arg5[%147, %c0_i32_97] : memref<4x8xf32, #tpu.memory_space<any>> -> memref<1x8xf32, #tpu.memory_space<any>>
      %c0_i32_98 = arith.constant 0 : i32
      %152 = tpu.memref_slice %arg12[%c0_i32_94, %c6_i32, %c0_i32_98] : memref<2x8x8xf32, #tpu.memory_space<vmem>> -> memref<1x1x8xf32, #tpu.memory_space<vmem>>
      %153 = tpu.memref_squeeze %152 : memref<1x1x8xf32, #tpu.memory_space<vmem>> -> memref<1x8xf32, #tpu.memory_space<vmem>>
      %154 = tpu.memref_slice %arg14[%c0_i32_95, %c0_i32_96] : memref<2x2x!tpu.dma_semaphore, #tpu.memory_space<semaphore_mem>> -> memref<1x1x!tpu.dma_semaphore, #tpu.memory_space<semaphore_mem>>
      %155 = tpu.memref_squeeze %154 : memref<1x1x!tpu.dma_semaphore, #tpu.memory_space<semaphore_mem>> -> memref<!tpu.dma_semaphore, #tpu.memory_space<semaphore_mem>>
      tpu.enqueue_dma source(%151 : memref<1x8xf32, #tpu.memory_space<any>>) target(%153 : memref<1x8xf32, #tpu.memory_space<vmem>>) target_semaphore(%155 : memref<!tpu.dma_semaphore, #tpu.memory_space<semaphore_mem>>)
      %c0_i32_99 = arith.constant 0 : i32
      %c1_i32_100 = arith.constant 1 : i32
      %c0_i32_101 = arith.constant 0 : i32
      %c0_i32_102 = arith.constant 0 : i32
      %156 = tpu.memref_slice %arg6[%150, %c0_i32_102] : memref<4x8xf32, #tpu.memory_space<any>> -> memref<1x8xf32, #tpu.memory_space<any>>
      %c0_i32_103 = arith.constant 0 : i32
      %157 = tpu.memref_slice %arg13[%c0_i32_99, %c6_i32, %c0_i32_103] : memref<2x8x8xf32, #tpu.memory_space<vmem>> -> memref<1x1x8xf32, #tpu.memory_space<vmem>>
      %158 = tpu.memref_squeeze %157 : memref<1x1x8xf32, #tpu.memory_space<vmem>> -> memref<1x8xf32, #tpu.memory_space<vmem>>
      %159 = tpu.memref_slice %arg14[%c1_i32_100, %c0_i32_101] : memref<2x2x!tpu.dma_semaphore, #tpu.memory_space<semaphore_mem>> -> memref<1x1x!tpu.dma_semaphore, #tpu.memory_space<semaphore_mem>>
      %160 = tpu.memref_squeeze %159 : memref<1x1x!tpu.dma_semaphore, #tpu.memory_space<semaphore_mem>> -> memref<!tpu.dma_semaphore, #tpu.memory_space<semaphore_mem>>
      tpu.enqueue_dma source(%156 : memref<1x8xf32, #tpu.memory_space<any>>) target(%158 : memref<1x8xf32, #tpu.memory_space<vmem>>) target_semaphore(%160 : memref<!tpu.dma_semaphore, #tpu.memory_space<semaphore_mem>>)
      %c7_i32 = arith.constant 7 : i32
      %161 = arith.addi %48, %c7_i32 : i32
      %162 = arith.index_cast %161 : i32 to index
      %163 = memref.load %arg2[%162] : memref<8xi32, #tpu.memory_space<smem>>
      %164 = arith.addi %48, %c7_i32 : i32
      %165 = arith.index_cast %164 : i32 to index
      %166 = memref.load %arg3[%165] : memref<8xi32, #tpu.memory_space<smem>>
      %c0_i32_104 = arith.constant 0 : i32
      %c0_i32_105 = arith.constant 0 : i32
      %c0_i32_106 = arith.constant 0 : i32
      %c0_i32_107 = arith.constant 0 : i32
      %167 = tpu.memref_slice %arg5[%163, %c0_i32_107] : memref<4x8xf32, #tpu.memory_space<any>> -> memref<1x8xf32, #tpu.memory_space<any>>
      %c0_i32_108 = arith.constant 0 : i32
      %168 = tpu.memref_slice %arg12[%c0_i32_104, %c7_i32, %c0_i32_108] : memref<2x8x8xf32, #tpu.memory_space<vmem>> -> memref<1x1x8xf32, #tpu.memory_space<vmem>>
      %169 = tpu.memref_squeeze %168 : memref<1x1x8xf32, #tpu.memory_space<vmem>> -> memref<1x8xf32, #tpu.memory_space<vmem>>
      %170 = tpu.memref_slice %arg14[%c0_i32_105, %c0_i32_106] : memref<2x2x!tpu.dma_semaphore, #tpu.memory_space<semaphore_mem>> -> memref<1x1x!tpu.dma_semaphore, #tpu.memory_space<semaphore_mem>>
      %171 = tpu.memref_squeeze %170 : memref<1x1x!tpu.dma_semaphore, #tpu.memory_space<semaphore_mem>> -> memref<!tpu.dma_semaphore, #tpu.memory_space<semaphore_mem>>
      tpu.enqueue_dma source(%167 : memref<1x8xf32, #tpu.memory_space<any>>) target(%169 : memref<1x8xf32, #tpu.memory_space<vmem>>) target_semaphore(%171 : memref<!tpu.dma_semaphore, #tpu.memory_space<semaphore_mem>>)
      %c0_i32_109 = arith.constant 0 : i32
      %c1_i32_110 = arith.constant 1 : i32
      %c0_i32_111 = arith.constant 0 : i32
      %c0_i32_112 = arith.constant 0 : i32
      %172 = tpu.memref_slice %arg6[%166, %c0_i32_112] : memref<4x8xf32, #tpu.memory_space<any>> -> memref<1x8xf32, #tpu.memory_space<any>>
      %c0_i32_113 = arith.constant 0 : i32
      %173 = tpu.memref_slice %arg13[%c0_i32_109, %c7_i32, %c0_i32_113] : memref<2x8x8xf32, #tpu.memory_space<vmem>> -> memref<1x1x8xf32, #tpu.memory_space<vmem>>
      %174 = tpu.memref_squeeze %173 : memref<1x1x8xf32, #tpu.memory_space<vmem>> -> memref<1x8xf32, #tpu.memory_space<vmem>>
      %175 = tpu.memref_slice %arg14[%c1_i32_110, %c0_i32_111] : memref<2x2x!tpu.dma_semaphore, #tpu.memory_space<semaphore_mem>> -> memref<1x1x!tpu.dma_semaphore, #tpu.memory_space<semaphore_mem>>
      %176 = tpu.memref_squeeze %175 : memref<1x1x!tpu.dma_semaphore, #tpu.memory_space<semaphore_mem>> -> memref<!tpu.dma_semaphore, #tpu.memory_space<semaphore_mem>>
      tpu.enqueue_dma source(%172 : memref<1x8xf32, #tpu.memory_space<any>>) target(%174 : memref<1x8xf32, #tpu.memory_space<vmem>>) target_semaphore(%176 : memref<!tpu.dma_semaphore, #tpu.memory_space<semaphore_mem>>)
      %c8_i32_114 = arith.constant 8 : i32
    } else {
    }
    %c1_i32_2 = arith.constant 1 : i32
    %6 = arith.addi %arg1, %c1_i32_2 : i32
    %c1_i32_3 = arith.constant 1 : i32
    %7 = arith.cmpi slt, %6, %c1_i32_3 : i32
    %8 = arith.extui %7 : i1 to i32
    %c0_i32_4 = arith.constant 0 : i32
    %9 = arith.cmpi ne, %8, %c0_i32_4 : i32
    scf.if %9 {
      %c1_i32_32 = arith.constant 1 : i32
      %48 = arith.addi %1, %c1_i32_32 : i32
      %c1_i32_33 = arith.constant 1 : i32
      %49 = arith.subi %c1_i32_33, %2 : i32
      %c8_i32 = arith.constant 8 : i32
      %50 = arith.muli %48, %c8_i32 : i32
      %c0_i32_34 = arith.constant 0 : i32
      %51 = arith.addi %50, %c0_i32_34 : i32
      %52 = arith.index_cast %51 : i32 to index
      %53 = memref.load %arg2[%52] : memref<8xi32, #tpu.memory_space<smem>>
      %54 = arith.addi %50, %c0_i32_34 : i32
      %55 = arith.index_cast %54 : i32 to index
      %56 = memref.load %arg3[%55] : memref<8xi32, #tpu.memory_space<smem>>
      %c0_i32_35 = arith.constant 0 : i32
      %c0_i32_36 = arith.constant 0 : i32
      %57 = tpu.memref_slice %arg5[%53, %c0_i32_36] : memref<4x8xf32, #tpu.memory_space<any>> -> memref<1x8xf32, #tpu.memory_space<any>>
      %c0_i32_37 = arith.constant 0 : i32
      %58 = tpu.memref_slice %arg12[%49, %c0_i32_34, %c0_i32_37] : memref<2x8x8xf32, #tpu.memory_space<vmem>> -> memref<1x1x8xf32, #tpu.memory_space<vmem>>
      %59 = tpu.memref_squeeze %58 : memref<1x1x8xf32, #tpu.memory_space<vmem>> -> memref<1x8xf32, #tpu.memory_space<vmem>>
      %60 = tpu.memref_slice %arg14[%c0_i32_35, %49] : memref<2x2x!tpu.dma_semaphore, #tpu.memory_space<semaphore_mem>> -> memref<1x1x!tpu.dma_semaphore, #tpu.memory_space<semaphore_mem>>
      %61 = tpu.memref_squeeze %60 : memref<1x1x!tpu.dma_semaphore, #tpu.memory_space<semaphore_mem>> -> memref<!tpu.dma_semaphore, #tpu.memory_space<semaphore_mem>>
      tpu.enqueue_dma source(%57 : memref<1x8xf32, #tpu.memory_space<any>>) target(%59 : memref<1x8xf32, #tpu.memory_space<vmem>>) target_semaphore(%61 : memref<!tpu.dma_semaphore, #tpu.memory_space<semaphore_mem>>)
      %c1_i32_38 = arith.constant 1 : i32
      %c0_i32_39 = arith.constant 0 : i32
      %62 = tpu.memref_slice %arg6[%56, %c0_i32_39] : memref<4x8xf32, #tpu.memory_space<any>> -> memref<1x8xf32, #tpu.memory_space<any>>
      %c0_i32_40 = arith.constant 0 : i32
      %63 = tpu.memref_slice %arg13[%49, %c0_i32_34, %c0_i32_40] : memref<2x8x8xf32, #tpu.memory_space<vmem>> -> memref<1x1x8xf32, #tpu.memory_space<vmem>>
      %64 = tpu.memref_squeeze %63 : memref<1x1x8xf32, #tpu.memory_space<vmem>> -> memref<1x8xf32, #tpu.memory_space<vmem>>
      %65 = tpu.memref_slice %arg14[%c1_i32_38, %49] : memref<2x2x!tpu.dma_semaphore, #tpu.memory_space<semaphore_mem>> -> memref<1x1x!tpu.dma_semaphore, #tpu.memory_space<semaphore_mem>>
      %66 = tpu.memref_squeeze %65 : memref<1x1x!tpu.dma_semaphore, #tpu.memory_space<semaphore_mem>> -> memref<!tpu.dma_semaphore, #tpu.memory_space<semaphore_mem>>
      tpu.enqueue_dma source(%62 : memref<1x8xf32, #tpu.memory_space<any>>) target(%64 : memref<1x8xf32, #tpu.memory_space<vmem>>) target_semaphore(%66 : memref<!tpu.dma_semaphore, #tpu.memory_space<semaphore_mem>>)
      %c1_i32_41 = arith.constant 1 : i32
      %67 = arith.addi %50, %c1_i32_41 : i32
      %68 = arith.index_cast %67 : i32 to index
      %69 = memref.load %arg2[%68] : memref<8xi32, #tpu.memory_space<smem>>
      %70 = arith.addi %50, %c1_i32_41 : i32
      %71 = arith.index_cast %70 : i32 to index
      %72 = memref.load %arg3[%71] : memref<8xi32, #tpu.memory_space<smem>>
      %c0_i32_42 = arith.constant 0 : i32
      %c0_i32_43 = arith.constant 0 : i32
      %73 = tpu.memref_slice %arg5[%69, %c0_i32_43] : memref<4x8xf32, #tpu.memory_space<any>> -> memref<1x8xf32, #tpu.memory_space<any>>
      %c0_i32_44 = arith.constant 0 : i32
      %74 = tpu.memref_slice %arg12[%49, %c1_i32_41, %c0_i32_44] : memref<2x8x8xf32, #tpu.memory_space<vmem>> -> memref<1x1x8xf32, #tpu.memory_space<vmem>>
      %75 = tpu.memref_squeeze %74 : memref<1x1x8xf32, #tpu.memory_space<vmem>> -> memref<1x8xf32, #tpu.memory_space<vmem>>
      %76 = tpu.memref_slice %arg14[%c0_i32_42, %49] : memref<2x2x!tpu.dma_semaphore, #tpu.memory_space<semaphore_mem>> -> memref<1x1x!tpu.dma_semaphore, #tpu.memory_space<semaphore_mem>>
      %77 = tpu.memref_squeeze %76 : memref<1x1x!tpu.dma_semaphore, #tpu.memory_space<semaphore_mem>> -> memref<!tpu.dma_semaphore, #tpu.memory_space<semaphore_mem>>
      tpu.enqueue_dma source(%73 : memref<1x8xf32, #tpu.memory_space<any>>) target(%75 : memref<1x8xf32, #tpu.memory_space<vmem>>) target_semaphore(%77 : memref<!tpu.dma_semaphore, #tpu.memory_space<semaphore_mem>>)
      %c1_i32_45 = arith.constant 1 : i32
      %c0_i32_46 = arith.constant 0 : i32
      %78 = tpu.memref_slice %arg6[%72, %c0_i32_46] : memref<4x8xf32, #tpu.memory_space<any>> -> memref<1x8xf32, #tpu.memory_space<any>>
      %c0_i32_47 = arith.constant 0 : i32
      %79 = tpu.memref_slice %arg13[%49, %c1_i32_41, %c0_i32_47] : memref<2x8x8xf32, #tpu.memory_space<vmem>> -> memref<1x1x8xf32, #tpu.memory_space<vmem>>
      %80 = tpu.memref_squeeze %79 : memref<1x1x8xf32, #tpu.memory_space<vmem>> -> memref<1x8xf32, #tpu.memory_space<vmem>>
      %81 = tpu.memref_slice %arg14[%c1_i32_45, %49] : memref<2x2x!tpu.dma_semaphore, #tpu.memory_space<semaphore_mem>> -> memref<1x1x!tpu.dma_semaphore, #tpu.memory_space<semaphore_mem>>
      %82 = tpu.memref_squeeze %81 : memref<1x1x!tpu.dma_semaphore, #tpu.memory_space<semaphore_mem>> -> memref<!tpu.dma_semaphore, #tpu.memory_space<semaphore_mem>>
      tpu.enqueue_dma source(%78 : memref<1x8xf32, #tpu.memory_space<any>>) target(%80 : memref<1x8xf32, #tpu.memory_space<vmem>>) target_semaphore(%82 : memref<!tpu.dma_semaphore, #tpu.memory_space<semaphore_mem>>)
      %c2_i32 = arith.constant 2 : i32
      %83 = arith.addi %50, %c2_i32 : i32
      %84 = arith.index_cast %83 : i32 to index
      %85 = memref.load %arg2[%84] : memref<8xi32, #tpu.memory_space<smem>>
      %86 = arith.addi %50, %c2_i32 : i32
      %87 = arith.index_cast %86 : i32 to index
      %88 = memref.load %arg3[%87] : memref<8xi32, #tpu.memory_space<smem>>
      %c0_i32_48 = arith.constant 0 : i32
      %c0_i32_49 = arith.constant 0 : i32
      %89 = tpu.memref_slice %arg5[%85, %c0_i32_49] : memref<4x8xf32, #tpu.memory_space<any>> -> memref<1x8xf32, #tpu.memory_space<any>>
      %c0_i32_50 = arith.constant 0 : i32
      %90 = tpu.memref_slice %arg12[%49, %c2_i32, %c0_i32_50] : memref<2x8x8xf32, #tpu.memory_space<vmem>> -> memref<1x1x8xf32, #tpu.memory_space<vmem>>
      %91 = tpu.memref_squeeze %90 : memref<1x1x8xf32, #tpu.memory_space<vmem>> -> memref<1x8xf32, #tpu.memory_space<vmem>>
      %92 = tpu.memref_slice %arg14[%c0_i32_48, %49] : memref<2x2x!tpu.dma_semaphore, #tpu.memory_space<semaphore_mem>> -> memref<1x1x!tpu.dma_semaphore, #tpu.memory_space<semaphore_mem>>
      %93 = tpu.memref_squeeze %92 : memref<1x1x!tpu.dma_semaphore, #tpu.memory_space<semaphore_mem>> -> memref<!tpu.dma_semaphore, #tpu.memory_space<semaphore_mem>>
      tpu.enqueue_dma source(%89 : memref<1x8xf32, #tpu.memory_space<any>>) target(%91 : memref<1x8xf32, #tpu.memory_space<vmem>>) target_semaphore(%93 : memref<!tpu.dma_semaphore, #tpu.memory_space<semaphore_mem>>)
      %c1_i32_51 = arith.constant 1 : i32
      %c0_i32_52 = arith.constant 0 : i32
      %94 = tpu.memref_slice %arg6[%88, %c0_i32_52] : memref<4x8xf32, #tpu.memory_space<any>> -> memref<1x8xf32, #tpu.memory_space<any>>
      %c0_i32_53 = arith.constant 0 : i32
      %95 = tpu.memref_slice %arg13[%49, %c2_i32, %c0_i32_53] : memref<2x8x8xf32, #tpu.memory_space<vmem>> -> memref<1x1x8xf32, #tpu.memory_space<vmem>>
      %96 = tpu.memref_squeeze %95 : memref<1x1x8xf32, #tpu.memory_space<vmem>> -> memref<1x8xf32, #tpu.memory_space<vmem>>
      %97 = tpu.memref_slice %arg14[%c1_i32_51, %49] : memref<2x2x!tpu.dma_semaphore, #tpu.memory_space<semaphore_mem>> -> memref<1x1x!tpu.dma_semaphore, #tpu.memory_space<semaphore_mem>>
      %98 = tpu.memref_squeeze %97 : memref<1x1x!tpu.dma_semaphore, #tpu.memory_space<semaphore_mem>> -> memref<!tpu.dma_semaphore, #tpu.memory_space<semaphore_mem>>
      tpu.enqueue_dma source(%94 : memref<1x8xf32, #tpu.memory_space<any>>) target(%96 : memref<1x8xf32, #tpu.memory_space<vmem>>) target_semaphore(%98 : memref<!tpu.dma_semaphore, #tpu.memory_space<semaphore_mem>>)
      %c3_i32 = arith.constant 3 : i32
      %99 = arith.addi %50, %c3_i32 : i32
      %100 = arith.index_cast %99 : i32 to index
      %101 = memref.load %arg2[%100] : memref<8xi32, #tpu.memory_space<smem>>
      %102 = arith.addi %50, %c3_i32 : i32
      %103 = arith.index_cast %102 : i32 to index
      %104 = memref.load %arg3[%103] : memref<8xi32, #tpu.memory_space<smem>>
      %c0_i32_54 = arith.constant 0 : i32
      %c0_i32_55 = arith.constant 0 : i32
      %105 = tpu.memref_slice %arg5[%101, %c0_i32_55] : memref<4x8xf32, #tpu.memory_space<any>> -> memref<1x8xf32, #tpu.memory_space<any>>
      %c0_i32_56 = arith.constant 0 : i32
      %106 = tpu.memref_slice %arg12[%49, %c3_i32, %c0_i32_56] : memref<2x8x8xf32, #tpu.memory_space<vmem>> -> memref<1x1x8xf32, #tpu.memory_space<vmem>>
      %107 = tpu.memref_squeeze %106 : memref<1x1x8xf32, #tpu.memory_space<vmem>> -> memref<1x8xf32, #tpu.memory_space<vmem>>
      %108 = tpu.memref_slice %arg14[%c0_i32_54, %49] : memref<2x2x!tpu.dma_semaphore, #tpu.memory_space<semaphore_mem>> -> memref<1x1x!tpu.dma_semaphore, #tpu.memory_space<semaphore_mem>>
      %109 = tpu.memref_squeeze %108 : memref<1x1x!tpu.dma_semaphore, #tpu.memory_space<semaphore_mem>> -> memref<!tpu.dma_semaphore, #tpu.memory_space<semaphore_mem>>
      tpu.enqueue_dma source(%105 : memref<1x8xf32, #tpu.memory_space<any>>) target(%107 : memref<1x8xf32, #tpu.memory_space<vmem>>) target_semaphore(%109 : memref<!tpu.dma_semaphore, #tpu.memory_space<semaphore_mem>>)
      %c1_i32_57 = arith.constant 1 : i32
      %c0_i32_58 = arith.constant 0 : i32
      %110 = tpu.memref_slice %arg6[%104, %c0_i32_58] : memref<4x8xf32, #tpu.memory_space<any>> -> memref<1x8xf32, #tpu.memory_space<any>>
      %c0_i32_59 = arith.constant 0 : i32
      %111 = tpu.memref_slice %arg13[%49, %c3_i32, %c0_i32_59] : memref<2x8x8xf32, #tpu.memory_space<vmem>> -> memref<1x1x8xf32, #tpu.memory_space<vmem>>
      %112 = tpu.memref_squeeze %111 : memref<1x1x8xf32, #tpu.memory_space<vmem>> -> memref<1x8xf32, #tpu.memory_space<vmem>>
      %113 = tpu.memref_slice %arg14[%c1_i32_57, %49] : memref<2x2x!tpu.dma_semaphore, #tpu.memory_space<semaphore_mem>> -> memref<1x1x!tpu.dma_semaphore, #tpu.memory_space<semaphore_mem>>
      %114 = tpu.memref_squeeze %113 : memref<1x1x!tpu.dma_semaphore, #tpu.memory_space<semaphore_mem>> -> memref<!tpu.dma_semaphore, #tpu.memory_space<semaphore_mem>>
      tpu.enqueue_dma source(%110 : memref<1x8xf32, #tpu.memory_space<any>>) target(%112 : memref<1x8xf32, #tpu.memory_space<vmem>>) target_semaphore(%114 : memref<!tpu.dma_semaphore, #tpu.memory_space<semaphore_mem>>)
      %c4_i32 = arith.constant 4 : i32
      %115 = arith.addi %50, %c4_i32 : i32
      %116 = arith.index_cast %115 : i32 to index
      %117 = memref.load %arg2[%116] : memref<8xi32, #tpu.memory_space<smem>>
      %118 = arith.addi %50, %c4_i32 : i32
      %119 = arith.index_cast %118 : i32 to index
      %120 = memref.load %arg3[%119] : memref<8xi32, #tpu.memory_space<smem>>
      %c0_i32_60 = arith.constant 0 : i32
      %c0_i32_61 = arith.constant 0 : i32
      %121 = tpu.memref_slice %arg5[%117, %c0_i32_61] : memref<4x8xf32, #tpu.memory_space<any>> -> memref<1x8xf32, #tpu.memory_space<any>>
      %c0_i32_62 = arith.constant 0 : i32
      %122 = tpu.memref_slice %arg12[%49, %c4_i32, %c0_i32_62] : memref<2x8x8xf32, #tpu.memory_space<vmem>> -> memref<1x1x8xf32, #tpu.memory_space<vmem>>
      %123 = tpu.memref_squeeze %122 : memref<1x1x8xf32, #tpu.memory_space<vmem>> -> memref<1x8xf32, #tpu.memory_space<vmem>>
      %124 = tpu.memref_slice %arg14[%c0_i32_60, %49] : memref<2x2x!tpu.dma_semaphore, #tpu.memory_space<semaphore_mem>> -> memref<1x1x!tpu.dma_semaphore, #tpu.memory_space<semaphore_mem>>
      %125 = tpu.memref_squeeze %124 : memref<1x1x!tpu.dma_semaphore, #tpu.memory_space<semaphore_mem>> -> memref<!tpu.dma_semaphore, #tpu.memory_space<semaphore_mem>>
      tpu.enqueue_dma source(%121 : memref<1x8xf32, #tpu.memory_space<any>>) target(%123 : memref<1x8xf32, #tpu.memory_space<vmem>>) target_semaphore(%125 : memref<!tpu.dma_semaphore, #tpu.memory_space<semaphore_mem>>)
      %c1_i32_63 = arith.constant 1 : i32
      %c0_i32_64 = arith.constant 0 : i32
      %126 = tpu.memref_slice %arg6[%120, %c0_i32_64] : memref<4x8xf32, #tpu.memory_space<any>> -> memref<1x8xf32, #tpu.memory_space<any>>
      %c0_i32_65 = arith.constant 0 : i32
      %127 = tpu.memref_slice %arg13[%49, %c4_i32, %c0_i32_65] : memref<2x8x8xf32, #tpu.memory_space<vmem>> -> memref<1x1x8xf32, #tpu.memory_space<vmem>>
      %128 = tpu.memref_squeeze %127 : memref<1x1x8xf32, #tpu.memory_space<vmem>> -> memref<1x8xf32, #tpu.memory_space<vmem>>
      %129 = tpu.memref_slice %arg14[%c1_i32_63, %49] : memref<2x2x!tpu.dma_semaphore, #tpu.memory_space<semaphore_mem>> -> memref<1x1x!tpu.dma_semaphore, #tpu.memory_space<semaphore_mem>>
      %130 = tpu.memref_squeeze %129 : memref<1x1x!tpu.dma_semaphore, #tpu.memory_space<semaphore_mem>> -> memref<!tpu.dma_semaphore, #tpu.memory_space<semaphore_mem>>
      tpu.enqueue_dma source(%126 : memref<1x8xf32, #tpu.memory_space<any>>) target(%128 : memref<1x8xf32, #tpu.memory_space<vmem>>) target_semaphore(%130 : memref<!tpu.dma_semaphore, #tpu.memory_space<semaphore_mem>>)
      %c5_i32 = arith.constant 5 : i32
      %131 = arith.addi %50, %c5_i32 : i32
      %132 = arith.index_cast %131 : i32 to index
      %133 = memref.load %arg2[%132] : memref<8xi32, #tpu.memory_space<smem>>
      %134 = arith.addi %50, %c5_i32 : i32
      %135 = arith.index_cast %134 : i32 to index
      %136 = memref.load %arg3[%135] : memref<8xi32, #tpu.memory_space<smem>>
      %c0_i32_66 = arith.constant 0 : i32
      %c0_i32_67 = arith.constant 0 : i32
      %137 = tpu.memref_slice %arg5[%133, %c0_i32_67] : memref<4x8xf32, #tpu.memory_space<any>> -> memref<1x8xf32, #tpu.memory_space<any>>
      %c0_i32_68 = arith.constant 0 : i32
      %138 = tpu.memref_slice %arg12[%49, %c5_i32, %c0_i32_68] : memref<2x8x8xf32, #tpu.memory_space<vmem>> -> memref<1x1x8xf32, #tpu.memory_space<vmem>>
      %139 = tpu.memref_squeeze %138 : memref<1x1x8xf32, #tpu.memory_space<vmem>> -> memref<1x8xf32, #tpu.memory_space<vmem>>
      %140 = tpu.memref_slice %arg14[%c0_i32_66, %49] : memref<2x2x!tpu.dma_semaphore, #tpu.memory_space<semaphore_mem>> -> memref<1x1x!tpu.dma_semaphore, #tpu.memory_space<semaphore_mem>>
      %141 = tpu.memref_squeeze %140 : memref<1x1x!tpu.dma_semaphore, #tpu.memory_space<semaphore_mem>> -> memref<!tpu.dma_semaphore, #tpu.memory_space<semaphore_mem>>
      tpu.enqueue_dma source(%137 : memref<1x8xf32, #tpu.memory_space<any>>) target(%139 : memref<1x8xf32, #tpu.memory_space<vmem>>) target_semaphore(%141 : memref<!tpu.dma_semaphore, #tpu.memory_space<semaphore_mem>>)
      %c1_i32_69 = arith.constant 1 : i32
      %c0_i32_70 = arith.constant 0 : i32
      %142 = tpu.memref_slice %arg6[%136, %c0_i32_70] : memref<4x8xf32, #tpu.memory_space<any>> -> memref<1x8xf32, #tpu.memory_space<any>>
      %c0_i32_71 = arith.constant 0 : i32
      %143 = tpu.memref_slice %arg13[%49, %c5_i32, %c0_i32_71] : memref<2x8x8xf32, #tpu.memory_space<vmem>> -> memref<1x1x8xf32, #tpu.memory_space<vmem>>
      %144 = tpu.memref_squeeze %143 : memref<1x1x8xf32, #tpu.memory_space<vmem>> -> memref<1x8xf32, #tpu.memory_space<vmem>>
      %145 = tpu.memref_slice %arg14[%c1_i32_69, %49] : memref<2x2x!tpu.dma_semaphore, #tpu.memory_space<semaphore_mem>> -> memref<1x1x!tpu.dma_semaphore, #tpu.memory_space<semaphore_mem>>
      %146 = tpu.memref_squeeze %145 : memref<1x1x!tpu.dma_semaphore, #tpu.memory_space<semaphore_mem>> -> memref<!tpu.dma_semaphore, #tpu.memory_space<semaphore_mem>>
      tpu.enqueue_dma source(%142 : memref<1x8xf32, #tpu.memory_space<any>>) target(%144 : memref<1x8xf32, #tpu.memory_space<vmem>>) target_semaphore(%146 : memref<!tpu.dma_semaphore, #tpu.memory_space<semaphore_mem>>)
      %c6_i32 = arith.constant 6 : i32
      %147 = arith.addi %50, %c6_i32 : i32
      %148 = arith.index_cast %147 : i32 to index
      %149 = memref.load %arg2[%148] : memref<8xi32, #tpu.memory_space<smem>>
      %150 = arith.addi %50, %c6_i32 : i32
      %151 = arith.index_cast %150 : i32 to index
      %152 = memref.load %arg3[%151] : memref<8xi32, #tpu.memory_space<smem>>
      %c0_i32_72 = arith.constant 0 : i32
      %c0_i32_73 = arith.constant 0 : i32
      %153 = tpu.memref_slice %arg5[%149, %c0_i32_73] : memref<4x8xf32, #tpu.memory_space<any>> -> memref<1x8xf32, #tpu.memory_space<any>>
      %c0_i32_74 = arith.constant 0 : i32
      %154 = tpu.memref_slice %arg12[%49, %c6_i32, %c0_i32_74] : memref<2x8x8xf32, #tpu.memory_space<vmem>> -> memref<1x1x8xf32, #tpu.memory_space<vmem>>
      %155 = tpu.memref_squeeze %154 : memref<1x1x8xf32, #tpu.memory_space<vmem>> -> memref<1x8xf32, #tpu.memory_space<vmem>>
      %156 = tpu.memref_slice %arg14[%c0_i32_72, %49] : memref<2x2x!tpu.dma_semaphore, #tpu.memory_space<semaphore_mem>> -> memref<1x1x!tpu.dma_semaphore, #tpu.memory_space<semaphore_mem>>
      %157 = tpu.memref_squeeze %156 : memref<1x1x!tpu.dma_semaphore, #tpu.memory_space<semaphore_mem>> -> memref<!tpu.dma_semaphore, #tpu.memory_space<semaphore_mem>>
      tpu.enqueue_dma source(%153 : memref<1x8xf32, #tpu.memory_space<any>>) target(%155 : memref<1x8xf32, #tpu.memory_space<vmem>>) target_semaphore(%157 : memref<!tpu.dma_semaphore, #tpu.memory_space<semaphore_mem>>)
      %c1_i32_75 = arith.constant 1 : i32
      %c0_i32_76 = arith.constant 0 : i32
      %158 = tpu.memref_slice %arg6[%152, %c0_i32_76] : memref<4x8xf32, #tpu.memory_space<any>> -> memref<1x8xf32, #tpu.memory_space<any>>
      %c0_i32_77 = arith.constant 0 : i32
      %159 = tpu.memref_slice %arg13[%49, %c6_i32, %c0_i32_77] : memref<2x8x8xf32, #tpu.memory_space<vmem>> -> memref<1x1x8xf32, #tpu.memory_space<vmem>>
      %160 = tpu.memref_squeeze %159 : memref<1x1x8xf32, #tpu.memory_space<vmem>> -> memref<1x8xf32, #tpu.memory_space<vmem>>
      %161 = tpu.memref_slice %arg14[%c1_i32_75, %49] : memref<2x2x!tpu.dma_semaphore, #tpu.memory_space<semaphore_mem>> -> memref<1x1x!tpu.dma_semaphore, #tpu.memory_space<semaphore_mem>>
      %162 = tpu.memref_squeeze %161 : memref<1x1x!tpu.dma_semaphore, #tpu.memory_space<semaphore_mem>> -> memref<!tpu.dma_semaphore, #tpu.memory_space<semaphore_mem>>
      tpu.enqueue_dma source(%158 : memref<1x8xf32, #tpu.memory_space<any>>) target(%160 : memref<1x8xf32, #tpu.memory_space<vmem>>) target_semaphore(%162 : memref<!tpu.dma_semaphore, #tpu.memory_space<semaphore_mem>>)
      %c7_i32 = arith.constant 7 : i32
      %163 = arith.addi %50, %c7_i32 : i32
      %164 = arith.index_cast %163 : i32 to index
      %165 = memref.load %arg2[%164] : memref<8xi32, #tpu.memory_space<smem>>
      %166 = arith.addi %50, %c7_i32 : i32
      %167 = arith.index_cast %166 : i32 to index
      %168 = memref.load %arg3[%167] : memref<8xi32, #tpu.memory_space<smem>>
      %c0_i32_78 = arith.constant 0 : i32
      %c0_i32_79 = arith.constant 0 : i32
      %169 = tpu.memref_slice %arg5[%165, %c0_i32_79] : memref<4x8xf32, #tpu.memory_space<any>> -> memref<1x8xf32, #tpu.memory_space<any>>
      %c0_i32_80 = arith.constant 0 : i32
      %170 = tpu.memref_slice %arg12[%49, %c7_i32, %c0_i32_80] : memref<2x8x8xf32, #tpu.memory_space<vmem>> -> memref<1x1x8xf32, #tpu.memory_space<vmem>>
      %171 = tpu.memref_squeeze %170 : memref<1x1x8xf32, #tpu.memory_space<vmem>> -> memref<1x8xf32, #tpu.memory_space<vmem>>
      %172 = tpu.memref_slice %arg14[%c0_i32_78, %49] : memref<2x2x!tpu.dma_semaphore, #tpu.memory_space<semaphore_mem>> -> memref<1x1x!tpu.dma_semaphore, #tpu.memory_space<semaphore_mem>>
      %173 = tpu.memref_squeeze %172 : memref<1x1x!tpu.dma_semaphore, #tpu.memory_space<semaphore_mem>> -> memref<!tpu.dma_semaphore, #tpu.memory_space<semaphore_mem>>
      tpu.enqueue_dma source(%169 : memref<1x8xf32, #tpu.memory_space<any>>) target(%171 : memref<1x8xf32, #tpu.memory_space<vmem>>) target_semaphore(%173 : memref<!tpu.dma_semaphore, #tpu.memory_space<semaphore_mem>>)
      %c1_i32_81 = arith.constant 1 : i32
      %c0_i32_82 = arith.constant 0 : i32
      %174 = tpu.memref_slice %arg6[%168, %c0_i32_82] : memref<4x8xf32, #tpu.memory_space<any>> -> memref<1x8xf32, #tpu.memory_space<any>>
      %c0_i32_83 = arith.constant 0 : i32
      %175 = tpu.memref_slice %arg13[%49, %c7_i32, %c0_i32_83] : memref<2x8x8xf32, #tpu.memory_space<vmem>> -> memref<1x1x8xf32, #tpu.memory_space<vmem>>
      %176 = tpu.memref_squeeze %175 : memref<1x1x8xf32, #tpu.memory_space<vmem>> -> memref<1x8xf32, #tpu.memory_space<vmem>>
      %177 = tpu.memref_slice %arg14[%c1_i32_81, %49] : memref<2x2x!tpu.dma_semaphore, #tpu.memory_space<semaphore_mem>> -> memref<1x1x!tpu.dma_semaphore, #tpu.memory_space<semaphore_mem>>
      %178 = tpu.memref_squeeze %177 : memref<1x1x!tpu.dma_semaphore, #tpu.memory_space<semaphore_mem>> -> memref<!tpu.dma_semaphore, #tpu.memory_space<semaphore_mem>>
      tpu.enqueue_dma source(%174 : memref<1x8xf32, #tpu.memory_space<any>>) target(%176 : memref<1x8xf32, #tpu.memory_space<vmem>>) target_semaphore(%178 : memref<!tpu.dma_semaphore, #tpu.memory_space<semaphore_mem>>)
      %c8_i32_84 = arith.constant 8 : i32
    } else {
    }
    %c0 = arith.constant 0 : index
    %c0_5 = arith.constant 0 : index
    %10 = vector.load %arg4[%c0, %c0_5] : memref<8x8xf32, #tpu.memory_space<vmem>>, vector<8x8xf32>
    %c0_6 = arith.constant 0 : index
    %c0_7 = arith.constant 0 : index
    %11 = vector.load %arg7[%c0_6, %c0_7] : memref<1x8xf32, #tpu.memory_space<vmem>>, vector<1x8xf32>
    %12 = vector.broadcast %11 : vector<1x8xf32> to vector<8x8xf32>
    %13 = arith.mulf %10, %12 : vector<8x8xf32>
    %cst = arith.constant dense<0.000000e+00> : vector<8xf32>
    %14 = vector.multi_reduction <add>, %13, %cst [1] : vector<8x8xf32> to vector<8xf32>
    %c0_i32_8 = arith.constant 0 : i32
    %c0_i32_9 = arith.constant 0 : i32
    %c0_i32_10 = arith.constant 0 : i32
    %15 = tpu.memref_slice %arg12[%2, %c0_i32_9, %c0_i32_10] : memref<2x8x8xf32, #tpu.memory_space<vmem>> -> memref<1x8x8xf32, #tpu.memory_space<vmem>>
    %16 = tpu.memref_squeeze %15 : memref<1x8x8xf32, #tpu.memory_space<vmem>> -> memref<8x8xf32, #tpu.memory_space<vmem>>
    %c0_i32_11 = arith.constant 0 : i32
    %c0_i32_12 = arith.constant 0 : i32
    %17 = tpu.memref_slice %arg12[%2, %c0_i32_11, %c0_i32_12] : memref<2x8x8xf32, #tpu.memory_space<vmem>> -> memref<1x8x8xf32, #tpu.memory_space<vmem>>
    %18 = tpu.memref_squeeze %17 : memref<1x8x8xf32, #tpu.memory_space<vmem>> -> memref<8x8xf32, #tpu.memory_space<vmem>>
    %19 = tpu.memref_slice %arg14[%c0_i32_8, %2] : memref<2x2x!tpu.dma_semaphore, #tpu.memory_space<semaphore_mem>> -> memref<1x1x!tpu.dma_semaphore, #tpu.memory_space<semaphore_mem>>
    %20 = tpu.memref_squeeze %19 : memref<1x1x!tpu.dma_semaphore, #tpu.memory_space<semaphore_mem>> -> memref<!tpu.dma_semaphore, #tpu.memory_space<semaphore_mem>>
    tpu.wait_dma2 semaphore(%20 : memref<!tpu.dma_semaphore, #tpu.memory_space<semaphore_mem>>) src(%16 : memref<8x8xf32, #tpu.memory_space<vmem>>) dst(%18 : memref<8x8xf32, #tpu.memory_space<vmem>>)
    %c1_i32_13 = arith.constant 1 : i32
    %c0_i32_14 = arith.constant 0 : i32
    %c0_i32_15 = arith.constant 0 : i32
    %21 = tpu.memref_slice %arg13[%2, %c0_i32_14, %c0_i32_15] : memref<2x8x8xf32, #tpu.memory_space<vmem>> -> memref<1x8x8xf32, #tpu.memory_space<vmem>>
    %22 = tpu.memref_squeeze %21 : memref<1x8x8xf32, #tpu.memory_space<vmem>> -> memref<8x8xf32, #tpu.memory_space<vmem>>
    %c0_i32_16 = arith.constant 0 : i32
    %c0_i32_17 = arith.constant 0 : i32
    %23 = tpu.memref_slice %arg13[%2, %c0_i32_16, %c0_i32_17] : memref<2x8x8xf32, #tpu.memory_space<vmem>> -> memref<1x8x8xf32, #tpu.memory_space<vmem>>
    %24 = tpu.memref_squeeze %23 : memref<1x8x8xf32, #tpu.memory_space<vmem>> -> memref<8x8xf32, #tpu.memory_space<vmem>>
    %25 = tpu.memref_slice %arg14[%c1_i32_13, %2] : memref<2x2x!tpu.dma_semaphore, #tpu.memory_space<semaphore_mem>> -> memref<1x1x!tpu.dma_semaphore, #tpu.memory_space<semaphore_mem>>
    %26 = tpu.memref_squeeze %25 : memref<1x1x!tpu.dma_semaphore, #tpu.memory_space<semaphore_mem>> -> memref<!tpu.dma_semaphore, #tpu.memory_space<semaphore_mem>>
    tpu.wait_dma2 semaphore(%26 : memref<!tpu.dma_semaphore, #tpu.memory_space<semaphore_mem>>) src(%22 : memref<8x8xf32, #tpu.memory_space<vmem>>) dst(%24 : memref<8x8xf32, #tpu.memory_space<vmem>>)
    %27 = arith.index_cast %2 : i32 to index
    %c0_18 = arith.constant 0 : index
    %c0_19 = arith.constant 0 : index
    %28 = vector.load %arg12[%27, %c0_18, %c0_19] : memref<2x8x8xf32, #tpu.memory_space<vmem>>, vector<1x8x8xf32>
    %29 = vector.shape_cast %28 : vector<1x8x8xf32> to vector<8x8xf32>
    %c0_20 = arith.constant 0 : index
    %c0_21 = arith.constant 0 : index
    %30 = vector.load %arg8[%c0_20, %c0_21] : memref<1x8xf32, #tpu.memory_space<vmem>>, vector<1x8xf32>
    %31 = vector.broadcast %30 : vector<1x8xf32> to vector<8x8xf32>
    %32 = arith.mulf %29, %31 : vector<8x8xf32>
    %33 = arith.index_cast %2 : i32 to index
    %c0_22 = arith.constant 0 : index
    %c0_23 = arith.constant 0 : index
    %34 = vector.load %arg13[%33, %c0_22, %c0_23] : memref<2x8x8xf32, #tpu.memory_space<vmem>>, vector<1x8x8xf32>
    %35 = vector.shape_cast %34 : vector<1x8x8xf32> to vector<8x8xf32>
    %c0_24 = arith.constant 0 : index
    %c0_25 = arith.constant 0 : index
    %36 = vector.load %arg9[%c0_24, %c0_25] : memref<1x8xf32, #tpu.memory_space<vmem>>, vector<1x8xf32>
    %37 = vector.broadcast %36 : vector<1x8xf32> to vector<8x8xf32>
    %38 = arith.mulf %35, %37 : vector<8x8xf32>
    %39 = arith.addf %32, %38 : vector<8x8xf32>
    %cst_26 = arith.constant dense<0.000000e+00> : vector<8xf32>
    %40 = vector.multi_reduction <add>, %39, %cst_26 [1] : vector<8x8xf32> to vector<8xf32>
    %41 = arith.addf %14, %40 : vector<8xf32>
    %42 = vector.shape_cast %41 : vector<8xf32> to vector<1x1x8xf32>
    %c0_27 = arith.constant 0 : index
    %c0_28 = arith.constant 0 : index
    %43 = vector.load %arg10[%c0_27, %c0_28] : memref<1x1xf32, #tpu.memory_space<vmem>>, vector<1x1xf32>
    %44 = vector.shape_cast %43 : vector<1x1xf32> to vector<1x1x1xf32>
    %45 = vector.broadcast %44 : vector<1x1x1xf32> to vector<1x1x8xf32>
    %46 = arith.addf %42, %45 : vector<1x1x8xf32>
    %c0_29 = arith.constant 0 : index
    %c0_30 = arith.constant 0 : index
    %c0_31 = arith.constant 0 : index
    %47 = vector.load %arg11[%c0_29, %c0_30, %c0_31] : memref<1x1x8xf32, #tpu.memory_space<vmem>>, vector<1x1x8xf32>
    tpu.vector_store %arg11[%c0_29, %c0_30, %c0_31], %46 {strides = array<i32>} : memref<1x1x8xf32, #tpu.memory_space<vmem>>, vector<1x1x8xf32>,
    return
  }
  func.func @transform_0(%arg0: i32, %arg1: i32, %arg2: memref<8xi32, #tpu.memory_space<smem>>, %arg3: memref<8xi32, #tpu.memory_space<smem>>) -> (i32, i32) {
    %c1_i32 = arith.constant 1 : i32
    %0 = arith.muli %arg0, %c1_i32 : i32
    %1 = arith.addi %0, %arg1 : i32
    %c0_i32 = arith.constant 0 : i32
    %c0_i32_0 = arith.constant 0 : i32
    return %1, %c0_i32 : i32, i32
  }
  func.func @transform_3(%arg0: i32, %arg1: i32, %arg2: memref<8xi32, #tpu.memory_space<smem>>, %arg3: memref<8xi32, #tpu.memory_space<smem>>) -> (i32, i32) {
    %c0_i32 = arith.constant 0 : i32
    %c0_i32_0 = arith.constant 0 : i32
    %c0_i32_1 = arith.constant 0 : i32
    return %c0_i32, %c0_i32_0 : i32, i32
  }
  func.func @transform_4(%arg0: i32, %arg1: i32, %arg2: memref<8xi32, #tpu.memory_space<smem>>, %arg3: memref<8xi32, #tpu.memory_space<smem>>) -> (i32, i32) {
    %c0_i32 = arith.constant 0 : i32
    %c0_i32_0 = arith.constant 0 : i32
    %c0_i32_1 = arith.constant 0 : i32
    return %c0_i32, %c0_i32_0 : i32, i32
  }
  func.func @transform_5(%arg0: i32, %arg1: i32, %arg2: memref<8xi32, #tpu.memory_space<smem>>, %arg3: memref<8xi32, #tpu.memory_space<smem>>) -> (i32, i32) {
    %c0_i32 = arith.constant 0 : i32
    %c0_i32_0 = arith.constant 0 : i32
    %c0_i32_1 = arith.constant 0 : i32
    return %c0_i32, %c0_i32_0 : i32, i32
  }
  func.func @transform_6(%arg0: i32, %arg1: i32, %arg2: memref<8xi32, #tpu.memory_space<smem>>, %arg3: memref<8xi32, #tpu.memory_space<smem>>) -> (i32, i32) {
    %c0_i32 = arith.constant 0 : i32
    %c0_i32_0 = arith.constant 0 : i32
    %c0_i32_1 = arith.constant 0 : i32
    return %c0_i32, %c0_i32_0 : i32, i32
  }
  func.func @transform_7(%arg0: i32, %arg1: i32, %arg2: memref<8xi32, #tpu.memory_space<smem>>, %arg3: memref<8xi32, #tpu.memory_space<smem>>) -> (i32, i32, i32) {
    %c1_i32 = arith.constant 1 : i32
    %0 = arith.muli %arg0, %c1_i32 : i32
    %1 = arith.addi %0, %arg1 : i32
    %c0_i32 = arith.constant 0 : i32
    %c0_i32_0 = arith.constant 0 : i32
    %c0_i32_1 = arith.constant 0 : i32
    return %1, %c0_i32, %c0_i32_0 : i32, i32, i32
  }
}

</mosaic_0001>

<bundles_post_ra>
// kernel: tpu_custom_call.1
= control target key start
LH: loop header
LB: loop body
LE: loop exit
PB: predicated region body
PF: predicated region fallthrough
CT: control target
= control target key end

     0   :  { %s2385_s0 = inlined_call_operand.vmem [shape: s32[8], index: 0, kind: input, shape index: {}]   ;;  %s2386_s2 = inlined_call_operand.vmem [shape: f32[8,8], index: 2, kind: input, shape index: {}]   ;;  %s2387_s3 = inlined_call_operand.vmem [shape: f32[4,8], index: 3, kind: input, shape index: {}]   ;;  %s2388_s4 = inlined_call_operand.vmem [shape: f32[4,8], index: 4, kind: input, shape index: {}]   ;;  %s2389_s5 = inlined_call_operand.vmem [shape: f32[1,8], index: 5, kind: input, shape index: {}]   ;;  %s2390_s6 = inlined_call_operand.vmem [shape: f32[1,8], index: 6, kind: input, shape index: {}]   ;;  %s2391_s7 = inlined_call_operand.vmem [shape: f32[1,8], index: 7, kind: input, shape index: {}]   ;;  %s2392_s9 = inlined_call_operand.hbm [shape: f32[1,1,8], index: 9, kind: output, shape index: {}]   ;;  %s2393_s1 = inlined_call_operand.vmem [shape: s32[8], index: 1, kind: input, shape index: {}]   ;;  %s2394_s8 = inlined_call_operand.<no memory space> [shape: f32[1,1], index: 8, kind: input, shape index: {}]  }
   0x1   :  { %s14_s11 = sshll.u32 %s2385_s0, 4  ;;  %s18_s14 = sshll.u32 %s2393_s1, 4  ;;  %v22_v0 = vstv %s2394_s8  ;;  %s15_s11 = int_to_ptr.vmem [resolvable:$true] %s14_s11  ;;  %s19_s14 = int_to_ptr.vmem [resolvable:$true] %s18_s14 }
   0x2   :  { %23 = vst [vmem:[#allocation8] sm:$0x1] %v22_v0  ;;  %s2194_s17 = scalar_lea.vmem %s15_s11, 16  ;;  %p2199_p1 = scmp.lt.s32.totalorder %s15_s11, %s15_s11 }
   0x3   :  { %p2195_p0 = scmp.ne.s32.totalorder %s15_s11, %s2194_s17  ;;  %p2200_p2 = scmp.lt.s32.totalorder %s2194_s17, %s2194_s17 }
   0x5   :  { %p2201_p3 = por %p2200_p2, %p2199_p1 }
   0x7   :  { %p2202_p4 = pnand %p2201_p3, %p2195_p0 }
   0x9   :  { %2205 = shalt.err (!%p2202_p4)  }
   0xa   :  { %s2248_s18 = smov [#allocation6]   ;;  %s2206_s0 = scalar_lea.vmem %s19_s14, 16 }
   0xb   :  { %17 = dma.vmem_to_smem %s15_s11, 16, %s2248_s18, [#allocation5] }
   0xc   :  { %p2207_p5 = scmp.ne.s32.totalorder %s19_s14, %s2206_s0  ;;  %p2211_p6 = scmp.lt.s32.totalorder %s19_s14, %s19_s14 }
   0xd   :  { %p2212_p7 = scmp.lt.s32.totalorder %s2206_s0, %s2206_s0 }
   0xf   :  { %p2213_p8 = por %p2212_p7, %p2211_p6 }
  0x11   :  { %p2214_p9 = pnand %p2213_p8, %p2207_p5 }
  0x13   :  { %2217 = shalt.err (!%p2214_p9)  }
  0x14   :  { %s2249_s1 = smov [#allocation7]  }
  0x15   :  { %21 = dma.vmem_to_smem %s19_s14, 16, %s2249_s1, [#allocation5] }
  0x16   :  { %2240 = dma.done.wait [#allocation5], 32 }
  0x17   :  { %2241 = vsyncadd [#allocation5], 4294967264 }
  0x18   :  { %25 = sfence }
  0x19   :  { %26 = vsyncpa [#allocation10], 0  ;;  %s62_s8 = sld [smem:[#allocation6]] }
  0x1a   :  { %s63_s19 = sld [smem:[#allocation7]] }
  0x1f   :  { %s64_s22 = scalar_lea.vmem %s2387_s3, %s62_s8 }
  0x20   :  { %v82_v1 = vld [vmem:[%s64_s22] sm:$0x1] }
  0x21   :  { %83 = vst [vmem:[#allocation2] sm:$0x1] %v82_v1 }
  0x22   :  { %108 = vsyncadd [#allocation4], 16  ;;  %s109_s25 = scalar_lea.vmem %s2388_s4, %s63_s19 }
  0x23   :  { %v128_v2 = vld [vmem:[%s109_s25] sm:$0x1] }
  0x24   :  { %129 = vst [vmem:[#allocation3] sm:$0x1] %v128_v2 }
  0x25   :  { %154 = vsyncadd [#allocation4 + $0x2], 16  ;;  %s2152_s26 = sld [smem:[#allocation6 + $0x1]] }
  0x26   :  { %s2153_s27 = sld [smem:[#allocation7 + $0x1]] }
  0x2b   :  { %s158_s30 = scalar_lea.vmem %s2387_s3, %s2152_s26 }
  0x2c   :  { %v177_v3 = vld [vmem:[%s158_s30] sm:$0x1] }
  0x2d   :  { %178 = vst [vmem:[#allocation2 + $0x1] sm:$0x1] %v177_v3 }
  0x2e   :  { %203 = vsyncadd [#allocation4], 16  ;;  %s204_s12 = scalar_lea.vmem %s2388_s4, %s2153_s27 }
  0x2f   :  { %v223_v4 = vld [vmem:[%s204_s12] sm:$0x1] }
  0x30   :  { %224 = vst [vmem:[#allocation3 + $0x1] sm:$0x1] %v223_v4 }
  0x31   :  { %249 = vsyncadd [#allocation4 + $0x2], 16  ;;  %s2154_s13 = sld [smem:[#allocation6 + $0x2]] }
  0x32   :  { %s2155_s14 = sld [smem:[#allocation7 + $0x2]] }
  0x37   :  { %s253_s17 = scalar_lea.vmem %s2387_s3, %s2154_s13 }
  0x38   :  { %v272_v5 = vld [vmem:[%s253_s17] sm:$0x1] }
  0x39   :  { %273 = vst [vmem:[#allocation2 + $0x2] sm:$0x1] %v272_v5 }
  0x3a   :  { %298 = vsyncadd [#allocation4], 16  ;;  %s299_s1 = scalar_lea.vmem %s2388_s4, %s2155_s14 }
  0x3b   :  { %v318_v6 = vld [vmem:[%s299_s1] sm:$0x1] }
  0x3c   :  { %319 = vst [vmem:[#allocation3 + $0x2] sm:$0x1] %v318_v6 }
  0x3d   :  { %344 = vsyncadd [#allocation4 + $0x2], 16  ;;  %s2156_s8 = sld [smem:[#allocation6 + $0x3]] }
  0x3e   :  { %s2157_s19 = sld [smem:[#allocation7 + $0x3]] }
  0x43   :  { %s348_s22 = scalar_lea.vmem %s2387_s3, %s2156_s8 }
  0x44   :  { %v367_v7 = vld [vmem:[%s348_s22] sm:$0x1] }
  0x45   :  { %368 = vst [vmem:[#allocation2 + $0x3] sm:$0x1] %v367_v7 }
  0x46   :  { %393 = vsyncadd [#allocation4], 16  ;;  %s394_s25 = scalar_lea.vmem %s2388_s4, %s2157_s19 }
  0x47   :  { %v413_v8 = vld [vmem:[%s394_s25] sm:$0x1] }
  0x48   :  { %414 = vst [vmem:[#allocation3 + $0x3] sm:$0x1] %v413_v8 }
  0x49   :  { %439 = vsyncadd [#allocation4 + $0x2], 16  ;;  %s2158_s26 = sld [smem:[#allocation6 + $0x4]] }
  0x4a   :  { %s2159_s27 = sld [smem:[#allocation7 + $0x4]] }
  0x4f   :  { %s443_s30 = scalar_lea.vmem %s2387_s3, %s2158_s26 }
  0x50   :  { %v462_v9 = vld [vmem:[%s443_s30] sm:$0x1] }
  0x51   :  { %463 = vst [vmem:[#allocation2 + $0x4] sm:$0x1] %v462_v9 }
  0x52   :  { %488 = vsyncadd [#allocation4], 16  ;;  %s489_s12 = scalar_lea.vmem %s2388_s4, %s2159_s27 }
  0x53   :  { %v508_v10 = vld [vmem:[%s489_s12] sm:$0x1] }
  0x54   :  { %509 = vst [vmem:[#allocation3 + $0x4] sm:$0x1] %v508_v10 }
  0x55   :  { %534 = vsyncadd [#allocation4 + $0x2], 16  ;;  %s2160_s13 = sld [smem:[#allocation6 + $0x5]] }
  0x56   :  { %s2161_s14 = sld [smem:[#allocation7 + $0x5]] }
  0x5b   :  { %s538_s17 = scalar_lea.vmem %s2387_s3, %s2160_s13 }
  0x5c   :  { %v557_v11 = vld [vmem:[%s538_s17] sm:$0x1] }
  0x5d   :  { %558 = vst [vmem:[#allocation2 + $0x5] sm:$0x1] %v557_v11 }
  0x5e   :  { %583 = vsyncadd [#allocation4], 16  ;;  %s584_s1 = scalar_lea.vmem %s2388_s4, %s2161_s14 }
  0x5f   :  { %v603_v12 = vld [vmem:[%s584_s1] sm:$0x1] }
  0x60   :  { %604 = vst [vmem:[#allocation3 + $0x5] sm:$0x1] %v603_v12 }
  0x61   :  { %629 = vsyncadd [#allocation4 + $0x2], 16  ;;  %s2162_s8 = sld [smem:[#allocation6 + $0x6]] }
  0x62   :  { %s2163_s19 = sld [smem:[#allocation7 + $0x6]] }
  0x67   :  { %s633_s22 = scalar_lea.vmem %s2387_s3, %s2162_s8 }
  0x68   :  { %v652_v13 = vld [vmem:[%s633_s22] sm:$0x1] }
  0x69   :  { %653 = vst [vmem:[#allocation2 + $0x6] sm:$0x1] %v652_v13 }
  0x6a   :  { %678 = vsyncadd [#allocation4], 16  ;;  %s679_s25 = scalar_lea.vmem %s2388_s4, %s2163_s19 }
  0x6b   :  { %v698_v14 = vld [vmem:[%s679_s25] sm:$0x1] }
  0x6c   :  { %699 = vst [vmem:[#allocation3 + $0x6] sm:$0x1] %v698_v14 }
  0x6d   :  { %724 = vsyncadd [#allocation4 + $0x2], 16  ;;  %s2164_s26 = sld [smem:[#allocation6 + $0x7]] }
  0x6e   :  { %s2165_s27 = sld [smem:[#allocation7 + $0x7]] }
  0x73   :  { %s728_s30 = scalar_lea.vmem %s2387_s3, %s2164_s26 }
  0x74   :  { %v747_v15 = vld [vmem:[%s728_s30] sm:$0x1] }
  0x75   :  { %748 = vst [vmem:[#allocation2 + $0x7] sm:$0x1] %v747_v15 }
  0x76   :  { %773 = vsyncadd [#allocation4], 16  ;;  %s774_s12 = scalar_lea.vmem %s2388_s4, %s2165_s27 }
  0x77   :  { %v793_v16 = vld [vmem:[%s774_s12] sm:$0x1] }
  0x78   :  { %794 = vst [vmem:[#allocation3 + $0x7] sm:$0x1] %v793_v16 }
  0x79   :  { %819 = vsyncadd [#allocation4 + $0x2], 16  ;;  %v1598_v17 = vld [vmem:[%s2386_s2] sm:$0xff]  ;;  %vm1607_vm0 = vcmask 64512  }
  0x7a   :  { %v2182_v18 = vld [vmem:[%s2389_s5] ss:$0 sm:$0xff] }
  0x7b   :  { %v1606_v19 = vmul.f32 %v2182_v18, %v1598_v17 }
  0x7d   :  { %v1608_v20 = vsel %vm1607_vm0, %v1606_v19, 0.0 }
  0x7e   :  { %1609 = vadd.xlane.f32.xlu0 %v1608_v20 }
 0x10b   :  { %v1610_v21 = vpop.xlane.xlu0 %1609 }
 0x10c   :  { %2242 = dma.done.wait [#allocation4], 128 }
 0x10d   :  { %2243 = vsyncadd [#allocation4], 4294967168 }
 0x10e   :  { %2244 = dma.done.wait [#allocation4 + $0x2], 128 }
 0x10f   :  { %2245 = vsyncadd [#allocation4 + $0x2], 4294967168  ;;  %v2250_v22 = vmov 0   ;;  %v1621_v23 = vld [vmem:[#allocation2] sm:$0xff]  ;;  %v1631_v25 = vld [vmem:[#allocation3] sm:$0xff]  ;;  %v1651_v32 = vlaneseq  ;;  %vm1664_vm1 = vcmask 57344  }
 0x110   :  { %2193 = vset.pattern.permute.xlu0 %v2250_v22  ;;  %v2183_v24 = vld [vmem:[%s2390_s6] ss:$0 sm:$0xff]  ;;  %s2251_s6 = smov [#allocation9]  }
 0x111   :  { %v1629_v26 = vmul.f32 %v2183_v24, %v1621_v23  ;;  %v2184_v27 = vld [vmem:[%s2391_s7] ss:$0 sm:$0xff]  ;;  %v1652_v33 = vshrl.u32 %v1651_v32, 7  ;;  %v1658_v36 = vand.u32 127, %v1651_v32  ;;  %s1675_s17 = sshll.u32 %s2251_s6, 4  ;;  %s1676_s17 = int_to_ptr.vmem [resolvable:$true] %s1675_s17 }
 0x112   :  { %v1639_v28 = vmul.f32 %v2184_v27, %v1631_v25  ;;  %v1645_v31 = vld [vmem:[#allocation8] sm:$0x1]  ;;  %s2218_s7 = scalar_lea.vmem %s1676_s17, 16  ;;  %s2222_s18 = scalar_lea.vmem %s1676_s17, 32 }
 0x113   :  { %v1653_v35 = vsub.s32 0, %v1652_v33  ;;  %v1661_v39 = vsub.s32 %v1658_v36, %v1652_v33  ;;  %p2219_p10 = scmp.ne.s32.totalorder %s1676_s17, %s2218_s7  ;;  %p2223_p11 = scmp.lt.s32.totalorder %s1676_s17, %s1676_s17 }
 0x114   :  { %v1640_v29 = vadd.f32 %v1639_v28, %v1629_v26  ;;  %p2224_p12 = scmp.lt.s32.totalorder %s2222_s18, %s2218_s7 }
 0x116   :  { %v1641_v30 = vsel %vm1607_vm0, %v1640_v29, 0.0  ;;  %p2225_p13 = por %p2224_p12, %p2223_p11 }
 0x117   :  { %1642 = vadd.xlane.f32.xlu0 %v1641_v30 }
 0x118   :  { %p2226_p0 = pnand %p2225_p13, %p2219_p10 }
 0x12d   :  { %1648 = vperm.xlu0 %2193, %v1645_v31  }
 0x1a4   :  { %v1643_v34 = vpop.xlane.xlu0 %1642 }
 0x1a5   :  { %v1644_v38 = vadd.f32 %v1643_v34, %v1610_v21 }
 0x1ac   :  { %v1649_v37 = vpop.permute.xlu0 %1648 }
 0x1ad   :  { %v1654_v40 = vrot.slane %v1649_v37, %v1653_v35 }
 0x1af   :  { %v1655_v41 = vadd.f32 %v1654_v40, %v1644_v38 }
 0x1b1   :  { %v1662_v42 = vrot.slane %v1655_v41, %v1661_v39 }
 0x1b3   :  { %1665 = vst.msk [vmem:[#allocation9] sm:$0x1] %vm1664_vm1, %v1662_v42 }
 0x1b4   :  { %2229 = shalt.err (!%p2226_p0)
}
 0x1b5   :  { %s2230_s8 = scalar_lea.hbm %s2392_s9, 16 }
 0x1b6   :  { %p2231_p1 = scmp.ne.s32.totalorder %s2392_s9, %s2230_s8  ;;  %p2234_p2 = scmp.lt.u32.totalorder %s2230_s8, %s2392_s9 }
 0x1b8   :  { %p2236_p3 = pnand %p2234_p2, %p2231_p1 }
 0x1ba   :  { %2239 = shalt.err (!%p2236_p3)
}
 0x1bb   :  { %1678 = dma.vmem_to_hbm [thread:$0]  %s1676_s17, 16, %s2392_s9, [#allocation10]  }
 0x1bc   :  { %2246 = dma.done.wait [#allocation10], 16  }
 0x1bd   :  { %2247 = vsyncadd [#allocation10], 4294967280 }
 0x1be   :  { %1682 = vsyncpa [#allocation10], 1 }
 0x1bf   :  { %1683 = vsyncmov [#allocation4] }
 0x1c2   :  { %s1684_s25 = vpop.sfrf %1683 }
 0x1c3   :  { %p2185_p4 = scmp.ne.s32.totalorder %s1684_s25, 0 }
 0x1c5   :  { %1688 = shalt.err (%p2185_p4)  }
 0x1c6   :  { %1690 = vsyncmov [#allocation4 + $0x1] }
 0x1c9   :  { %s1691_s26 = vpop.sfrf %1690 }
 0x1ca   :  { %p2186_p5 = scmp.ne.s32.totalorder %s1691_s26, 0 }
 0x1cc   :  { %1695 = shalt.err (%p2186_p5)  }
 0x1cd   :  { %1697 = vsyncmov [#allocation4 + $0x2] }
 0x1d0   :  { %s1698_s27 = vpop.sfrf %1697 }
 0x1d1   :  { %p2187_p6 = scmp.ne.s32.totalorder %s1698_s27, 0 }
 0x1d3   :  { %1702 = shalt.err (%p2187_p6)  }
 0x1d4   :  { %1704 = vsyncmov [#allocation4 + $0x3] }
 0x1d7   :  { %s1705_s28 = vpop.sfrf %1704 }
 0x1d8   :  { %p2188_p7 = scmp.ne.s32.totalorder %s1705_s28, 0 }
 0x1da   :  { %1709 = shalt.err (%p2188_p7)  }

</bundles_post_ra>
